<compile_context>
chip_gen: v6e
topology: v6e:2x2x1
jax: 0.10.0
libtpu: 0.0.40
codegen_flags: <defaults>
</compile_context>

<pallas_src>
import functools
import math

import numpy as np

import jax
import jax.numpy as jnp
from jax.experimental import pallas as pl
from jax.experimental.pallas import tpu as pltpu


# -----------------------------------------------------------------------------
# Host-side parameter preparation (runs once)
# -----------------------------------------------------------------------------
def _build_kfolded_toeplitz(w_folded, width, cin_pad):
    """Fold the 3x3 taps + width 'same'-padding into ONE block-Toeplitz weight.

    w_folded: (3, 3, Cin, Cout) f32 with the BN scale already folded in.
    Returns T of shape (3*width*cin_pad, width*Cout) bf16 such that
        out[(n,h), :] = concat_kh( x_pad[n, h+kh-1, :, :] .flatten() ) @ T
    reproduces the 3x3 'same' convolution (the 3 kw taps and the W-direction
    zero padding are folded into T; the kh row-shift is built by the kernel).
    cin_pad >= Cin: extra input channels map to all-zero weight rows (used to
    make W*Cin0 a lane-dense multiple of 128).
    """
    _, _, cin, cout = w_folded.shape
    w_np = np.asarray(w_folded, np.float32)
    t = np.zeros((3, width * cin_pad, width * cout), np.float32)
    for kh in range(3):
        for kw in range(3):
            for wo in range(width):
                wi = wo + kw - 1                      # input column of this tap
                if 0 <= wi < width:                   # OOB columns == zero pad
                    t[kh,
                      wi * cin_pad:wi * cin_pad + cin,
                      wo * cout:(wo + 1) * cout] = w_np[kh, kw]
    # Stack the 3 kh taps along K: ONE matmul per block, K = 3*W*Cin.
    return jnp.asarray(t.reshape(3 * width * cin_pad, width * cout), jnp.bfloat16)


def _prepare_block_params(block_params, width, cin0_pad):
    """Fold BN scale into conv weights; build K-folded Toeplitz + tiled biases."""
    toes, biases = [], []
    for i, (w, scale, bias) in enumerate(block_params):
        w_folded = w * scale[None, None, None, :]     # fold BN scale (f32, exact)
        cin_pad = cin0_pad if i == 0 else w.shape[2]
        toes.append(_build_kfolded_toeplitz(w_folded, width, cin_pad))
        cout = w.shape[3]
        b_tiled = np.tile(np.asarray(bias, np.float32), width).reshape(1, width * cout)
        biases.append(jnp.asarray(b_tiled, jnp.float32))
    return tuple(toes), tuple(biases)


# -----------------------------------------------------------------------------
# Fused kernel: the whole block chain in one pallas_call
# -----------------------------------------------------------------------------
def _make_fused_chain_kernel(batch, height, width, cins, couts):
    """Ref layout (all full-array blocks, grid=(1,)):
      inputs : x2d    (N, H, W*Cin0)            bf16
               toe_i  (3*W*Cin_i, W*Cout_i)     bf16   (per block, kh folded into K)
               bias_i (1, W*Cout_i)             f32    (per block)
      outputs: feat_i (N, H, W*Cout_i)          bf16   (per block, lane-dense;
                                                         doubles as the next
                                                         block's activation)
      scratch: lhs    (N*H, 3*W*max(Cin))       bf16   (single, reused per block)
    """
    n_blocks = len(couts)
    m = batch * height

    def kernel(*refs):
        x_ref = refs[0]
        w_refs = refs[1:1 + n_blocks]
        b_refs = refs[1 + n_blocks:1 + 2 * n_blocks]
        out_refs = refs[1 + 2 * n_blocks:1 + 3 * n_blocks]
        lhs_scr = refs[1 + 3 * n_blocks]

        for i in range(n_blocks):
            cin, cout = cins[i], couts[i]
            wc = width * cin            # lane width of one kh column block (%128==0)
            kdim = 3 * wc               # matmul K
            ndim = width * cout         # matmul N / output lane width (%128==0)

            # Activation source: kernel input for block 0, previous block's
            # (bf16, VMEM-resident) output ref afterwards -- no f32 temp is
            # carried across block boundaries.
            act_ref = x_ref if i == 0 else out_refs[i - 1]
            act = act_ref[...]                                   # (N, H, wc) bf16

            # Build the K-folded lhs with 3 lane-aligned, full-sublane
            # column-block stores.  Only the two 1-row halos are zeroed.
            # Center tap (kh=1): straight bf16 store, no cast.
            lhs_scr[:, wc:2 * wc] = act.reshape(m, wc)
            # Shifted taps (kh=0 reads row h-1, kh=2 reads row h+1).  The
            # one-sublane shift is done on f32 vregs (packed-sublane shifts of
            # bf16 are avoided for lowering robustness at negligible VPU cost),
            # then downcast and stored lane-aligned.
            a32 = act.astype(jnp.float32)
            zrow = jnp.zeros((batch, 1, wc), jnp.float32)
            up = jnp.concatenate([zrow, a32[:, :height - 1, :]], axis=1)
            dn = jnp.concatenate([a32[:, 1:, :], zrow], axis=1)
            lhs_scr[:, 0:wc] = up.astype(jnp.bfloat16).reshape(m, wc)
            lhs_scr[:, 2 * wc:3 * wc] = dn.astype(jnp.bfloat16).reshape(m, wc)

            # ONE MXU matmul per block: (M, 3*W*Cin) x (3*W*Cin, W*Cout),
            # bf16 inputs, f32 accumulate.
            acc = jnp.dot(lhs_scr[:, :kdim], w_refs[i][...],
                          preferred_element_type=jnp.float32)

            # Epilogue stays f32 (v5e has no bf16 VPU/EUP): folded-BN bias + SiLU.
            z = acc + b_refs[i][...]
            y = z * jax.nn.sigmoid(z)

            # Lane-dense bf16 feature writeback; also feeds the next block.
            out_refs[i][...] = y.astype(out_refs[i].dtype).reshape(batch, height, ndim)

    return kernel


def _full_spec(shape):
    rank = len(shape)
    return pl.BlockSpec(shape, lambda *_: (0,) * rank)


@functools.partial(jax.jit, static_argnames=("cins", "couts"))
def _feature_chain(x_nhwc, toes, biases, *, cins, couts):
    batch, height, width, c0 = x_nhwc.shape
    n_blocks = len(couts)
    c0_pad = cins[0]
    assert c0 <= c0_pad

    # Zero-pad block-0 input channels so W*Cin0 is a multiple of 128 (the extra
    # channels multiply zero weight rows -> exact no-op).  bf16 input halves the
    # HBM read; the MXU inputs are bf16 anyway (f32 accumulate in-kernel).
    if c0_pad != c0:
        x_nhwc = jnp.pad(x_nhwc, ((0, 0), (0, 0), (0, 0), (0, c0_pad - c0)))
    x2d = x_nhwc.astype(jnp.bfloat16).reshape(batch, height, width * c0_pad)

    out_shapes = tuple(
        jax.ShapeDtypeStruct((batch, height, width * couts[i]), jnp.bfloat16)
        for i in range(n_blocks))

    in_specs = [_full_spec(x2d.shape)]
    in_specs += [_full_spec(t.shape) for t in toes]
    in_specs += [_full_spec(b.shape) for b in biases]
    out_specs = tuple(_full_spec(s.shape) for s in out_shapes)

    # Single reusable bf16 lhs scratch sized for the largest block (max, not sum).
    scratch = [pltpu.VMEM((batch * height, 3 * width * max(cins)), jnp.bfloat16)]

    outs = pl.pallas_call(
        _make_fused_chain_kernel(batch, height, width, cins, couts),
        out_shape=out_shapes,
        grid=(1,),
        in_specs=in_specs,
        out_specs=out_specs,
        scratch_shapes=scratch,
        compiler_params=pltpu.CompilerParams(
            dimension_semantics=("arbitrary",),
            # explicit scoped-VMEM budget (>= v5e's 16 MiB default, <= v7x physical)
            vmem_limit_bytes=32 * 1024 * 1024),
    )(x2d, *toes, *biases)

    # (N, H, W*C) -> NHWC is a free last-dim split.
    return tuple(outs[i].reshape(batch, height, width, couts[i])
                 for i in range(n_blocks))


class EfficientNetFeatureExtractor:
    """JAX/Pallas port of the Extractor: runs every block and returns the list of
    intermediate features.  The whole chain is ONE fused pallas_call with
    VMEM-resident bf16 intermediates; features are returned in NHWC bf16
    (transpose / upcast once at the boundary if required downstream)."""

    def __init__(self, block_params, spatial_width):
        assert len(block_params) > 0
        c0 = block_params[0][0].shape[2]
        couts = tuple(p[0].shape[3] for p in block_params)
        # Smallest Cin0 padding making W*Cin0 a multiple of 128.
        mult = 128 // math.gcd(spatial_width, 128)
        c0_pad = -(-c0 // mult) * mult
        for c in couts:
            assert (spatial_width * c) % 128 == 0, "toy shapes keep W*Cout lane-dense"
        self.width = spatial_width
        self.cins = (c0_pad,) + couts[:-1]
        self.couts = couts
        self.toes, self.biases = _prepare_block_params(block_params, spatial_width,
                                                       c0_pad)

    def __call__(self, x_nhwc):
        return list(_feature_chain(x_nhwc, self.toes, self.biases,
                                   cins=self.cins, couts=self.couts))


# -----------------------------------------------------------------------------
# Deterministic synthetic parameters + pure-JAX reference
# -----------------------------------------------------------------------------
def _make_block_params(key, channels):
    params = []
    for i in range(len(channels) - 1):
        cin, cout = channels[i], channels[i + 1]
        k_w, k_s, k_b, key = jax.random.split(key, 4)
        fan_in = 3 * 3 * cin
        w = jax.random.normal(k_w, (3, 3, cin, cout), jnp.float32) / jnp.sqrt(fan_in)
        # Folded BatchNorm (eval mode): scale = gamma/sqrt(var+eps), bias folded.
        scale = 1.0 + 0.1 * jax.random.normal(k_s, (cout,), jnp.float32)
        bias = 0.1 * jax.random.normal(k_b, (cout,), jnp.float32)
        params.append((w, scale, bias))
    return params


def _reference_block(x_nhwc, w, scale, bias):
    """Pure-JAX reference with the same numerics as the kernel: folded-BN bf16
    weights/activations on the MXU, f32 accumulate, f32 bias + SiLU."""
    w_folded = (w * scale[None, None, None, :]).astype(jnp.bfloat16)
    y = jax.lax.conv_general_dilated(
        x_nhwc.astype(jnp.bfloat16), w_folded,
        window_strides=(1, 1), padding="SAME",
        dimension_numbers=("NHWC", "HWIO", "NHWC"),
        preferred_element_type=jnp.float32)
    z = y + bias[None, None, None, :]
    return z * jax.nn.sigmoid(z)


if __name__ == "__main__":
    key = jax.random.PRNGKey(0)
    k_x, k_p = jax.random.split(key)

    # Small shapes consistent with the module: batch=2, C=4, H=W=16.
    N, C, H, W = 2, 4, 16, 16
    x_nchw = jax.random.normal(k_x, (N, C, H, W), jnp.float32)

    # 3 blocks: 4 -> 8 -> 16 -> 32 channels.
    channels = [C, 8, 16, 32]
    block_params = _make_block_params(k_p, channels)

    model = EfficientNetFeatureExtractor(block_params, spatial_width=W)

    # Single NCHW -> NHWC transpose at the boundary; features stay NHWC.
    x_nhwc = jnp.transpose(x_nchw, (0, 2, 3, 1))
    feats = model(x_nhwc)
    feats = [jax.block_until_ready(f) for f in feats]
    assert len(feats) == len(block_params)

    # Per-block correctness check: each block's output is compared against a
    # pure-JAX reference fed with the kernel's own previous feature, so the
    # only differences are f32 accumulation order and the bf16 feature
    # writeback (a few bf16 ulps on O(1) values).
    prev = x_nhwc
    for i, (w, scale, bias) in enumerate(block_params):
        want = _reference_block(prev, w, scale, bias)        # f32 reference
        got = feats[i].astype(jnp.float32)                   # kernel emits bf16
        assert got.shape == want.shape, (got.shape, want.shape)
        err = float(jnp.max(jnp.abs(got - want)))
        assert err < 5e-2, f"block {i} mismatch: max abs err {err}"
        prev = feats[i]

    print("KERNEL_OK")
</pallas_src>

<mosaic_0001>
module attributes {stable_mosaic.version = 11 : i64} {
  func.func @kernel(%arg0: i32, %arg1: memref<2x16x128xbf16, #tpu.memory_space<vmem>>, %arg2: memref<384x128xbf16, #tpu.memory_space<vmem>>, %arg3: memref<384x256xbf16, #tpu.memory_space<vmem>>, %arg4: memref<768x512xbf16, #tpu.memory_space<vmem>>, %arg5: memref<1x128xf32, #tpu.memory_space<vmem>>, %arg6: memref<1x256xf32, #tpu.memory_space<vmem>>, %arg7: memref<1x512xf32, #tpu.memory_space<vmem>>, %arg8: memref<2x16x128xbf16, #tpu.memory_space<vmem>>, %arg9: memref<2x16x256xbf16, #tpu.memory_space<vmem>>, %arg10: memref<2x16x512xbf16, #tpu.memory_space<vmem>>, %arg11: memref<32x768xbf16, #tpu.memory_space<vmem>>) attributes {dimension_semantics = [#tpu.dimension_semantics<arbitrary>], iteration_bounds = array<i64: 1>, scalar_prefetch = 0 : i64, scratch_operands = 1 : i64, tpu.core_type = #tpu.core_type<tc>, window_params = [{pipeline_mode = #tpu.pipeline_mode<synchronous>, transform_indices = @transform_0, window_bounds = array<i64: 2, 16, 128>}, {pipeline_mode = #tpu.pipeline_mode<synchronous>, transform_indices = @transform_1, window_bounds = array<i64: 384, 128>}, {pipeline_mode = #tpu.pipeline_mode<synchronous>, transform_indices = @transform_2, window_bounds = array<i64: 384, 256>}, {pipeline_mode = #tpu.pipeline_mode<synchronous>, transform_indices = @transform_3, window_bounds = array<i64: 768, 512>}, {pipeline_mode = #tpu.pipeline_mode<synchronous>, transform_indices = @transform_4, window_bounds = array<i64: 1, 128>}, {pipeline_mode = #tpu.pipeline_mode<synchronous>, transform_indices = @transform_5, window_bounds = array<i64: 1, 256>}, {pipeline_mode = #tpu.pipeline_mode<synchronous>, transform_indices = @transform_6, window_bounds = array<i64: 1, 512>}, {pipeline_mode = #tpu.pipeline_mode<synchronous>, transform_indices = @transform_7, window_bounds = array<i64: 2, 16, 128>}, {pipeline_mode = #tpu.pipeline_mode<synchronous>, transform_indices = @transform_8, window_bounds = array<i64: 2, 16, 256>}, {pipeline_mode = #tpu.pipeline_mode<synchronous>, transform_indices = @transform_9, window_bounds = array<i64: 2, 16, 512>}]} {
    %c0 = arith.constant 0 : index
    %c0_0 = arith.constant 0 : index
    %c0_1 = arith.constant 0 : index
    %0 = vector.load %arg1[%c0, %c0_0, %c0_1] : memref<2x16x128xbf16, #tpu.memory_space<vmem>>, vector<2x16x128xbf16>
    %1 = vector.shape_cast %0 : vector<2x16x128xbf16> to vector<32x128xbf16>
    %c0_2 = arith.constant 0 : index
    %c128 = arith.constant 128 : index
    %2 = vector.load %arg11[%c0_2, %c128] : memref<32x768xbf16, #tpu.memory_space<vmem>>, vector<32x128xbf16>
    tpu.vector_store %arg11[%c0_2, %c128], %1 {strides = array<i32>} : memref<32x768xbf16, #tpu.memory_space<vmem>>, vector<32x128xbf16>,
    %3 = arith.extf %0 : vector<2x16x128xbf16> to vector<2x16x128xf32>
    %cst = arith.constant 0.000000e+00 : f32
    %4 = vector.broadcast %cst : f32 to vector<2x1x128xf32>
    %5 = vector.extract_strided_slice %3 {offsets = [0, 0, 0], sizes = [2, 15, 128], strides = [1, 1, 1]} : vector<2x16x128xf32> to vector<2x15x128xf32>
    %6 = tpu.concatenate %4, %5 in 1 : vector<2x1x128xf32>, vector<2x15x128xf32> -> vector<2x16x128xf32>
    %7 = vector.extract_strided_slice %3 {offsets = [0, 1, 0], sizes = [2, 15, 128], strides = [1, 1, 1]} : vector<2x16x128xf32> to vector<2x15x128xf32>
    %8 = tpu.concatenate %7, %4 in 1 : vector<2x15x128xf32>, vector<2x1x128xf32> -> vector<2x16x128xf32>
    %9 = arith.truncf %6 : vector<2x16x128xf32> to vector<2x16x128xbf16>
    %10 = vector.shape_cast %9 : vector<2x16x128xbf16> to vector<32x128xbf16>
    %c0_3 = arith.constant 0 : index
    %c0_4 = arith.constant 0 : index
    %11 = vector.load %arg11[%c0_3, %c0_4] : memref<32x768xbf16, #tpu.memory_space<vmem>>, vector<32x128xbf16>
    tpu.vector_store %arg11[%c0_3, %c0_4], %10 {strides = array<i32>} : memref<32x768xbf16, #tpu.memory_space<vmem>>, vector<32x128xbf16>,
    %12 = arith.truncf %8 : vector<2x16x128xf32> to vector<2x16x128xbf16>
    %13 = vector.shape_cast %12 : vector<2x16x128xbf16> to vector<32x128xbf16>
    %c0_5 = arith.constant 0 : index
    %c256 = arith.constant 256 : index
    %14 = vector.load %arg11[%c0_5, %c256] : memref<32x768xbf16, #tpu.memory_space<vmem>>, vector<32x128xbf16>
    tpu.vector_store %arg11[%c0_5, %c256], %13 {strides = array<i32>} : memref<32x768xbf16, #tpu.memory_space<vmem>>, vector<32x128xbf16>,
    %c0_6 = arith.constant 0 : index
    %c0_7 = arith.constant 0 : index
    %15 = vector.load %arg11[%c0_6, %c0_7] : memref<32x768xbf16, #tpu.memory_space<vmem>>, vector<32x384xbf16>
    %c0_8 = arith.constant 0 : index
    %c0_9 = arith.constant 0 : index
    %16 = vector.load %arg2[%c0_8, %c0_9] : memref<384x128xbf16, #tpu.memory_space<vmem>>, vector<384x128xbf16>
    %cst_10 = arith.constant dense<0.000000e+00> : vector<32x128xf32>
    %17 = tpu.matmul %15, %16, %cst_10 {dimension_numbers = #tpu.dot_dimension_numbers<[1], [0], [0], [1], [0, 0, 1, 1], [], []>} : vector<32x384xbf16>, vector<384x128xbf16>, vector<32x128xf32> -> vector<32x128xf32>
    %c0_11 = arith.constant 0 : index
    %c0_12 = arith.constant 0 : index
    %18 = vector.load %arg5[%c0_11, %c0_12] : memref<1x128xf32, #tpu.memory_space<vmem>>, vector<1x128xf32>
    %19 = vector.broadcast %18 : vector<1x128xf32> to vector<32x128xf32>
    %20 = arith.addf %17, %19 : vector<32x128xf32>
    %21 = arith.negf %20 : vector<32x128xf32>
    %22 = math.exp %21 : vector<32x128xf32>
    %cst_13 = arith.constant 1.000000e+00 : f32
    %23 = vector.broadcast %cst_13 : f32 to vector<32x128xf32>
    %24 = arith.addf %23, %22 : vector<32x128xf32>
    %25 = arith.divf %23, %24 : vector<32x128xf32>
    %26 = arith.mulf %20, %25 : vector<32x128xf32>
    %27 = arith.truncf %26 : vector<32x128xf32> to vector<32x128xbf16>
    %28 = vector.shape_cast %27 : vector<32x128xbf16> to vector<2x16x128xbf16>
    %c0_14 = arith.constant 0 : index
    %c0_15 = arith.constant 0 : index
    %c0_16 = arith.constant 0 : index
    %29 = vector.load %arg8[%c0_14, %c0_15, %c0_16] : memref<2x16x128xbf16, #tpu.memory_space<vmem>>, vector<2x16x128xbf16>
    tpu.vector_store %arg8[%c0_14, %c0_15, %c0_16], %28 {strides = array<i32>} : memref<2x16x128xbf16, #tpu.memory_space<vmem>>, vector<2x16x128xbf16>,
    %c0_17 = arith.constant 0 : index
    %c0_18 = arith.constant 0 : index
    %c0_19 = arith.constant 0 : index
    %30 = vector.load %arg8[%c0_17, %c0_18, %c0_19] : memref<2x16x128xbf16, #tpu.memory_space<vmem>>, vector<2x16x128xbf16>
    %31 = vector.shape_cast %30 : vector<2x16x128xbf16> to vector<32x128xbf16>
    %c0_20 = arith.constant 0 : index
    %c128_21 = arith.constant 128 : index
    %32 = vector.load %arg11[%c0_20, %c128_21] : memref<32x768xbf16, #tpu.memory_space<vmem>>, vector<32x128xbf16>
    tpu.vector_store %arg11[%c0_20, %c128_21], %31 {strides = array<i32>} : memref<32x768xbf16, #tpu.memory_space<vmem>>, vector<32x128xbf16>,
    %33 = arith.extf %30 : vector<2x16x128xbf16> to vector<2x16x128xf32>
    %cst_22 = arith.constant 0.000000e+00 : f32
    %34 = vector.broadcast %cst_22 : f32 to vector<2x1x128xf32>
    %35 = vector.extract_strided_slice %33 {offsets = [0, 0, 0], sizes = [2, 15, 128], strides = [1, 1, 1]} : vector<2x16x128xf32> to vector<2x15x128xf32>
    %36 = tpu.concatenate %34, %35 in 1 : vector<2x1x128xf32>, vector<2x15x128xf32> -> vector<2x16x128xf32>
    %37 = vector.extract_strided_slice %33 {offsets = [0, 1, 0], sizes = [2, 15, 128], strides = [1, 1, 1]} : vector<2x16x128xf32> to vector<2x15x128xf32>
    %38 = tpu.concatenate %37, %34 in 1 : vector<2x15x128xf32>, vector<2x1x128xf32> -> vector<2x16x128xf32>
    %39 = arith.truncf %36 : vector<2x16x128xf32> to vector<2x16x128xbf16>
    %40 = vector.shape_cast %39 : vector<2x16x128xbf16> to vector<32x128xbf16>
    %c0_23 = arith.constant 0 : index
    %c0_24 = arith.constant 0 : index
    %41 = vector.load %arg11[%c0_23, %c0_24] : memref<32x768xbf16, #tpu.memory_space<vmem>>, vector<32x128xbf16>
    tpu.vector_store %arg11[%c0_23, %c0_24], %40 {strides = array<i32>} : memref<32x768xbf16, #tpu.memory_space<vmem>>, vector<32x128xbf16>,
    %42 = arith.truncf %38 : vector<2x16x128xf32> to vector<2x16x128xbf16>
    %43 = vector.shape_cast %42 : vector<2x16x128xbf16> to vector<32x128xbf16>
    %c0_25 = arith.constant 0 : index
    %c256_26 = arith.constant 256 : index
    %44 = vector.load %arg11[%c0_25, %c256_26] : memref<32x768xbf16, #tpu.memory_space<vmem>>, vector<32x128xbf16>
    tpu.vector_store %arg11[%c0_25, %c256_26], %43 {strides = array<i32>} : memref<32x768xbf16, #tpu.memory_space<vmem>>, vector<32x128xbf16>,
    %c0_27 = arith.constant 0 : index
    %c0_28 = arith.constant 0 : index
    %45 = vector.load %arg11[%c0_27, %c0_28] : memref<32x768xbf16, #tpu.memory_space<vmem>>, vector<32x384xbf16>
    %c0_29 = arith.constant 0 : index
    %c0_30 = arith.constant 0 : index
    %46 = vector.load %arg3[%c0_29, %c0_30] : memref<384x256xbf16, #tpu.memory_space<vmem>>, vector<384x256xbf16>
    %cst_31 = arith.constant dense<0.000000e+00> : vector<32x256xf32>
    %47 = tpu.matmul %45, %46, %cst_31 {dimension_numbers = #tpu.dot_dimension_numbers<[1], [0], [0], [1], [0, 0, 1, 1], [], []>} : vector<32x384xbf16>, vector<384x256xbf16>, vector<32x256xf32> -> vector<32x256xf32>
    %c0_32 = arith.constant 0 : index
    %c0_33 = arith.constant 0 : index
    %48 = vector.load %arg6[%c0_32, %c0_33] : memref<1x256xf32, #tpu.memory_space<vmem>>, vector<1x256xf32>
    %49 = vector.broadcast %48 : vector<1x256xf32> to vector<32x256xf32>
    %50 = arith.addf %47, %49 : vector<32x256xf32>
    %51 = arith.negf %50 : vector<32x256xf32>
    %52 = math.exp %51 : vector<32x256xf32>
    %cst_34 = arith.constant 1.000000e+00 : f32
    %53 = vector.broadcast %cst_34 : f32 to vector<32x256xf32>
    %54 = arith.addf %53, %52 : vector<32x256xf32>
    %55 = arith.divf %53, %54 : vector<32x256xf32>
    %56 = arith.mulf %50, %55 : vector<32x256xf32>
    %57 = arith.truncf %56 : vector<32x256xf32> to vector<32x256xbf16>
    %58 = vector.shape_cast %57 : vector<32x256xbf16> to vector<2x16x256xbf16>
    %c0_35 = arith.constant 0 : index
    %c0_36 = arith.constant 0 : index
    %c0_37 = arith.constant 0 : index
    %59 = vector.load %arg9[%c0_35, %c0_36, %c0_37] : memref<2x16x256xbf16, #tpu.memory_space<vmem>>, vector<2x16x256xbf16>
    tpu.vector_store %arg9[%c0_35, %c0_36, %c0_37], %58 {strides = array<i32>} : memref<2x16x256xbf16, #tpu.memory_space<vmem>>, vector<2x16x256xbf16>,
    %c0_38 = arith.constant 0 : index
    %c0_39 = arith.constant 0 : index
    %c0_40 = arith.constant 0 : index
    %60 = vector.load %arg9[%c0_38, %c0_39, %c0_40] : memref<2x16x256xbf16, #tpu.memory_space<vmem>>, vector<2x16x256xbf16>
    %61 = vector.shape_cast %60 : vector<2x16x256xbf16> to vector<32x256xbf16>
    %c0_41 = arith.constant 0 : index
    %c256_42 = arith.constant 256 : index
    %62 = vector.load %arg11[%c0_41, %c256_42] : memref<32x768xbf16, #tpu.memory_space<vmem>>, vector<32x256xbf16>
    tpu.vector_store %arg11[%c0_41, %c256_42], %61 {strides = array<i32>} : memref<32x768xbf16, #tpu.memory_space<vmem>>, vector<32x256xbf16>,
    %63 = arith.extf %60 : vector<2x16x256xbf16> to vector<2x16x256xf32>
    %cst_43 = arith.constant 0.000000e+00 : f32
    %64 = vector.broadcast %cst_43 : f32 to vector<2x1x256xf32>
    %65 = vector.extract_strided_slice %63 {offsets = [0, 0, 0], sizes = [2, 15, 256], strides = [1, 1, 1]} : vector<2x16x256xf32> to vector<2x15x256xf32>
    %66 = tpu.concatenate %64, %65 in 1 : vector<2x1x256xf32>, vector<2x15x256xf32> -> vector<2x16x256xf32>
    %67 = vector.extract_strided_slice %63 {offsets = [0, 1, 0], sizes = [2, 15, 256], strides = [1, 1, 1]} : vector<2x16x256xf32> to vector<2x15x256xf32>
    %68 = tpu.concatenate %67, %64 in 1 : vector<2x15x256xf32>, vector<2x1x256xf32> -> vector<2x16x256xf32>
    %69 = arith.truncf %66 : vector<2x16x256xf32> to vector<2x16x256xbf16>
    %70 = vector.shape_cast %69 : vector<2x16x256xbf16> to vector<32x256xbf16>
    %c0_44 = arith.constant 0 : index
    %c0_45 = arith.constant 0 : index
    %71 = vector.load %arg11[%c0_44, %c0_45] : memref<32x768xbf16, #tpu.memory_space<vmem>>, vector<32x256xbf16>
    tpu.vector_store %arg11[%c0_44, %c0_45], %70 {strides = array<i32>} : memref<32x768xbf16, #tpu.memory_space<vmem>>, vector<32x256xbf16>,
    %72 = arith.truncf %68 : vector<2x16x256xf32> to vector<2x16x256xbf16>
    %73 = vector.shape_cast %72 : vector<2x16x256xbf16> to vector<32x256xbf16>
    %c0_46 = arith.constant 0 : index
    %c512 = arith.constant 512 : index
    %74 = vector.load %arg11[%c0_46, %c512] : memref<32x768xbf16, #tpu.memory_space<vmem>>, vector<32x256xbf16>
    tpu.vector_store %arg11[%c0_46, %c512], %73 {strides = array<i32>} : memref<32x768xbf16, #tpu.memory_space<vmem>>, vector<32x256xbf16>,
    %c0_47 = arith.constant 0 : index
    %c0_48 = arith.constant 0 : index
    %75 = vector.load %arg11[%c0_47, %c0_48] : memref<32x768xbf16, #tpu.memory_space<vmem>>, vector<32x768xbf16>
    %c0_49 = arith.constant 0 : index
    %c0_50 = arith.constant 0 : index
    %76 = vector.load %arg4[%c0_49, %c0_50] : memref<768x512xbf16, #tpu.memory_space<vmem>>, vector<768x512xbf16>
    %cst_51 = arith.constant dense<0.000000e+00> : vector<32x512xf32>
    %77 = tpu.matmul %75, %76, %cst_51 {dimension_numbers = #tpu.dot_dimension_numbers<[1], [0], [0], [1], [0, 0, 1, 1], [], []>} : vector<32x768xbf16>, vector<768x512xbf16>, vector<32x512xf32> -> vector<32x512xf32>
    %c0_52 = arith.constant 0 : index
    %c0_53 = arith.constant 0 : index
    %78 = vector.load %arg7[%c0_52, %c0_53] : memref<1x512xf32, #tpu.memory_space<vmem>>, vector<1x512xf32>
    %79 = vector.broadcast %78 : vector<1x512xf32> to vector<32x512xf32>
    %80 = arith.addf %77, %79 : vector<32x512xf32>
    %81 = arith.negf %80 : vector<32x512xf32>
    %82 = math.exp %81 : vector<32x512xf32>
    %cst_54 = arith.constant 1.000000e+00 : f32
    %83 = vector.broadcast %cst_54 : f32 to vector<32x512xf32>
    %84 = arith.addf %83, %82 : vector<32x512xf32>
    %85 = arith.divf %83, %84 : vector<32x512xf32>
    %86 = arith.mulf %80, %85 : vector<32x512xf32>
    %87 = arith.truncf %86 : vector<32x512xf32> to vector<32x512xbf16>
    %88 = vector.shape_cast %87 : vector<32x512xbf16> to vector<2x16x512xbf16>
    %c0_55 = arith.constant 0 : index
    %c0_56 = arith.constant 0 : index
    %c0_57 = arith.constant 0 : index
    %89 = vector.load %arg10[%c0_55, %c0_56, %c0_57] : memref<2x16x512xbf16, #tpu.memory_space<vmem>>, vector<2x16x512xbf16>
    tpu.vector_store %arg10[%c0_55, %c0_56, %c0_57], %88 {strides = array<i32>} : memref<2x16x512xbf16, #tpu.memory_space<vmem>>, vector<2x16x512xbf16>,
    return
  }
  func.func @transform_0(%arg0: i32) -> (i32, i32, i32) {
    %c0_i32 = arith.constant 0 : i32
    %c0_i32_0 = arith.constant 0 : i32
    %c0_i32_1 = arith.constant 0 : i32
    %c0_i32_2 = arith.constant 0 : i32
    return %c0_i32, %c0_i32_0, %c0_i32_1 : i32, i32, i32
  }
  func.func @transform_1(%arg0: i32) -> (i32, i32) {
    %c0_i32 = arith.constant 0 : i32
    %c0_i32_0 = arith.constant 0 : i32
    %c0_i32_1 = arith.constant 0 : i32
    return %c0_i32, %c0_i32_0 : i32, i32
  }
  func.func @transform_2(%arg0: i32) -> (i32, i32) {
    %c0_i32 = arith.constant 0 : i32
    %c0_i32_0 = arith.constant 0 : i32
    %c0_i32_1 = arith.constant 0 : i32
    return %c0_i32, %c0_i32_0 : i32, i32
  }
  func.func @transform_3(%arg0: i32) -> (i32, i32) {
    %c0_i32 = arith.constant 0 : i32
    %c0_i32_0 = arith.constant 0 : i32
    %c0_i32_1 = arith.constant 0 : i32
    return %c0_i32, %c0_i32_0 : i32, i32
  }
  func.func @transform_4(%arg0: i32) -> (i32, i32) {
    %c0_i32 = arith.constant 0 : i32
    %c0_i32_0 = arith.constant 0 : i32
    %c0_i32_1 = arith.constant 0 : i32
    return %c0_i32, %c0_i32_0 : i32, i32
  }
  func.func @transform_5(%arg0: i32) -> (i32, i32) {
    %c0_i32 = arith.constant 0 : i32
    %c0_i32_0 = arith.constant 0 : i32
    %c0_i32_1 = arith.constant 0 : i32
    return %c0_i32, %c0_i32_0 : i32, i32
  }
  func.func @transform_6(%arg0: i32) -> (i32, i32) {
    %c0_i32 = arith.constant 0 : i32
    %c0_i32_0 = arith.constant 0 : i32
    %c0_i32_1 = arith.constant 0 : i32
    return %c0_i32, %c0_i32_0 : i32, i32
  }
  func.func @transform_7(%arg0: i32) -> (i32, i32, i32) {
    %c0_i32 = arith.constant 0 : i32
    %c0_i32_0 = arith.constant 0 : i32
    %c0_i32_1 = arith.constant 0 : i32
    %c0_i32_2 = arith.constant 0 : i32
    return %c0_i32, %c0_i32_0, %c0_i32_1 : i32, i32, i32
  }
  func.func @transform_8(%arg0: i32) -> (i32, i32, i32) {
    %c0_i32 = arith.constant 0 : i32
    %c0_i32_0 = arith.constant 0 : i32
    %c0_i32_1 = arith.constant 0 : i32
    %c0_i32_2 = arith.constant 0 : i32
    return %c0_i32, %c0_i32_0, %c0_i32_1 : i32, i32, i32
  }
  func.func @transform_9(%arg0: i32) -> (i32, i32, i32) {
    %c0_i32 = arith.constant 0 : i32
    %c0_i32_0 = arith.constant 0 : i32
    %c0_i32_1 = arith.constant 0 : i32
    %c0_i32_2 = arith.constant 0 : i32
    return %c0_i32, %c0_i32_0, %c0_i32_1 : i32, i32, i32
  }
}

</mosaic_0001>

<bundles_post_ra>
// kernel: _feature_chain.1
= control target key start
LH: loop header
LB: loop body
LE: loop exit
PB: predicated region body
PF: predicated region fallthrough
CT: control target
= control target key end

     0   :  { %15 = vsyncpa [#allocation4], 0  ;;  %s4066_s30 = smov [#allocation3]   ;;  %s4670_s0 = inlined_call_operand.vmem [shape: bf16[2,16,128], index: 0, kind: input, shape index: {}]   ;;  %s4671_s1 = inlined_call_operand.vmem [shape: bf16[384,128], index: 1, kind: input, shape index: {}]   ;;  %s4672_s2 = inlined_call_operand.vmem [shape: bf16[384,256], index: 2, kind: input, shape index: {}]   ;;  %s4673_s3 = inlined_call_operand.hbm [shape: bf16[768,512], index: 3, kind: input, shape index: {}]   ;;  %s4674_s4 = inlined_call_operand.vmem [shape: f32[1,128], index: 4, kind: input, shape index: {}]   ;;  %s4675_s5 = inlined_call_operand.vmem [shape: f32[1,256], index: 5, kind: input, shape index: {}]   ;;  %s4676_s6 = inlined_call_operand.vmem [shape: f32[1,512], index: 6, kind: input, shape index: {}]   ;;  %s4677_s7 = inlined_call_operand.vmem [shape: bf16[2,16,128], index: 7, kind: output, shape index: {0}]   ;;  %s4678_s8 = inlined_call_operand.vmem [shape: bf16[2,16,256], index: 8, kind: output, shape index: {1}]   ;;  %s4679_s9 = inlined_call_operand.vmem [shape: bf16[2,16,512], index: 9, kind: output, shape index: {2}]  }
   0x1   :  { %s27_s10 = sshll.u32 %s4066_s30, 4  ;;  %s28_s10 = int_to_ptr.vmem [resolvable:$true] %s27_s10 }
   0x2   :  { %s4052_s11 = scalar_lea.vmem %s28_s10, 24576  ;;  %p4057_p1 = scmp.lt.s32.totalorder %s28_s10, %s28_s10 }
   0x3   :  { %p4053_p0 = scmp.ne.s32.totalorder %s28_s10, %s4052_s11  ;;  %p4058_p2 = scmp.lt.s32.totalorder %s4052_s11, %s4052_s11 }
   0x5   :  { %p4059_p3 = por %p4058_p2, %p4057_p1 }
   0x7   :  { %p4060_p4 = pnand %p4059_p3, %p4053_p0 }
   0x9   :  { %4063 = shalt.err (!%p4060_p4)
}
   0xa   :  { %s4067_s12 = smov 256   ;;  %s4068_s13 = smov 16  }
   0xb   :  { %33 = dma.hbm_to_vmem [thread:$0]  %s4673_s3, 24576, %s28_s10, [#allocation4], %s4067_s12, %s4067_s12, %s4068_s13  }
   0xc   :  { %4064 = dma.done.wait [#allocation4], 24576  }
   0xd   :  { %4065 = vsyncadd [#allocation4], 4294942720  ;;  %v3464_v0 = vld [vmem:[%s4671_s1 + $0x78] sm:$0xff]   ;;  %v3467_v3 = vld [vmem:[%s4671_s1 + $0x70] sm:$0xff]   ;;  %vm60_vm0 = vcmask 1040384   ;;  %vm73_vm1 = vcmask 1046528  }
   0xe   :  { %v3465_v1 = vld [vmem:[%s4671_s1 + $0xb8] sm:$0xff]   ;;  %3402 = vmatprep.subr.bf16.mxu0 %v3464_v0  ;;  %v3468_v4 = vld [vmem:[%s4671_s1 + $0xb0] sm:$0xff]   ;;  %v3470_v6 = vld [vmem:[%s4671_s1 + $0x68] sm:$0xff]   ;;  %vm4070_vm3 = vmmov 1  }
   0xf   :  { %v3466_v2 = vld [vmem:[%s4671_s1 + $0x38] sm:$0xff]   ;;  %3440 = vmatprep.subr.bf16.mxu1 %v3465_v1  ;;  %v3469_v5 = vld [vmem:[%s4671_s1 + $0x30] sm:$0xff]   ;;  %v3471_v7 = vld [vmem:[%s4671_s1 + $0xa8] sm:$0xff]  }
  0x10   :  { %3403 = vmatpush3.bf16.msra.mxu0 %v3466_v2  ;;  %3441 = vmatpush3.bf16.msra.mxu1 %v3465_v1  ;;  %v3472_v8 = vld [vmem:[%s4671_s1 + $0x28] sm:$0xff]   ;;  %v3473_v9 = vld [vmem:[%s4671_s1 + $0x60] sm:$0xff]   ;;  %v3476_v12 = vld [vmem:[%s4671_s1 + $0x58] sm:$0xff]  }
  0x11   :  { %3404 = vmatprep.subr.bf16.mxu0 %v3467_v3  ;;  %3442 = vmatprep.subr.bf16.mxu1 %v3468_v4  ;;  %v3474_v10 = vld [vmem:[%s4671_s1 + $0xa0] sm:$0xff]   ;;  %v3477_v13 = vld [vmem:[%s4671_s1 + $0x98] sm:$0xff]   ;;  %v3479_v15 = vld [vmem:[%s4671_s1 + $0x50] sm:$0xff]  }
  0x12   :  { %v3475_v11 = vld [vmem:[%s4671_s1 + $0x20] sm:$0xff]   ;;  %v3478_v14 = vld [vmem:[%s4671_s1 + $0x18] sm:$0xff]   ;;  %v3480_v16 = vld [vmem:[%s4671_s1 + $0x90] sm:$0xff]  }
  0x13   :  { %v3481_v17 = vld [vmem:[%s4671_s1 + $0x10] sm:$0xff]   ;;  %v3482_v18 = vld [vmem:[%s4671_s1 + $0x48] sm:$0xff]   ;;  %v3485_v21 = vld [vmem:[%s4671_s1 + $0x40] sm:$0xff]  }
  0x14   :  { %3405 = vmatpush3.bf16.msra.mxu0 %v3469_v5  ;;  %3443 = vmatpush3.bf16.msra.mxu1 %v3468_v4  ;;  %v3483_v19 = vld [vmem:[%s4671_s1 + $0x88] sm:$0xff]   ;;  %v3486_v22 = vld [vmem:[%s4671_s1 + $0x80] sm:$0xff]   ;;  %v3498_v62 = vld [vmem:[%s4672_s2 + $0x74] ss:$8 sps:$4 sm:$0xff]  }
  0x15   :  { %3406 = vmatprep.subr.bf16.mxu0 %v3470_v6  ;;  %3444 = vmatprep.subr.bf16.mxu1 %v3471_v7  ;;  %v3484_v20 = vld [vmem:[%s4671_s1 + $0x8] sm:$0xff]   ;;  %v44_v23 = vld [vmem:[%s4670_s0] sm:$0xf]  ;;  %v45_v24 = vld [vmem:[%s4670_s0 + $0x4] sm:$0xf] }
  0x16   :  { %v46_v25 = vld [vmem:[%s4670_s0 + $0x8] sm:$0xf]  ;;  %48 = vst [vmem:[#allocation2 + $0x4] sm:$0xf] %v44_v23  ;;  %49 = vst [vmem:[#allocation2 + $0x1c] sm:$0xf] %v45_v24  ;;  %v52_v26 = vunpack.c.l.bf16 %v44_v23  ;;  %v53_v27 = vunpack.c.l.bf16 %v45_v24 }
  0x17   :  { %v47_v28 = vld [vmem:[%s4670_s0 + $0xc] sm:$0xf]  ;;  %v54_v29 = vunpack.c.l.bf16 %v46_v25  ;;  %50 = vst [vmem:[#allocation2 + $0x34] sm:$0xf] %v46_v25  ;;  %v3487_v30 = vld [vmem:[%s4671_s1] sm:$0xff]   ;;  %vm3982_vm2 = vmneg %vm60_vm0 }
  0x18   :  { %3407 = vmatpush3.bf16.msra.mxu0 %v3472_v8  ;;  %3445 = vmatpush3.bf16.msra.mxu1 %v3471_v7  ;;  %v55_v31 = vunpack.c.l.bf16 %v47_v28  ;;  %51 = vst [vmem:[#allocation2 + $0x4c] sm:$0xf] %v47_v28  ;;  %v61_v32 = vrot.slane %v52_v26, 7  ;;  %v62_v33 = vrot.slane %v53_v27, 7  ;;  %v74_v34 = vrot.slane %v52_v26, 1  ;;  %vm4496_vm4 = vmpackc.low %vm4070_vm3, %vm3982_vm2 }
  0x19   :  { %3408 = vmatprep.subr.bf16.mxu0 %v3473_v9  ;;  %3446 = vmatprep.subr.bf16.mxu1 %v3474_v10  ;;  %v75_v35 = vrot.slane %v53_v27, 1  ;;  %v77_v37 = vrot.slane %v54_v29, 1  ;;  %v64_v39 = vrot.slane %v54_v29, 7  ;;  %v3496_v63 = vld [vmem:[%s4672_s2 + $0x70] ss:$8 sps:$4 sm:$0xff]   ;;  %vm4542_vm5 = vmpackc.low %vm73_vm1, %vm4070_vm3 }
  0x1a   :  { %v65_v36 = vrot.slane %v55_v31, 7  ;;  %v78_v38 = vrot.slane %v55_v31, 1  ;;  %v63_v40 = vsel %vm60_vm0, %v61_v32, %v62_v33  ;;  %v71_v41 = vsel %vm60_vm0, 0.0, %v61_v32  ;;  %v3501_v0 = vld [vmem:[%s4672_s2 + $0x64] ss:$8 sps:$4 sm:$0xff]  }
  0x1b   :  { %v76_v42 = vsel %vm73_vm1, %v74_v34, %v75_v35  ;;  %v84_v43 = vsel %vm73_vm1, %v75_v35, 0.0  ;;  %v3351_v44 = vpack.c.bf16 %v71_v41, %v71_v41  ;;  %v3352_v45 = vpack.c.bf16 %v63_v40, %v63_v40  ;;  %v3499_v1 = vld [vmem:[%s4672_s2 + $0x60] ss:$8 sps:$4 sm:$0xff]   ;;  %v3504_v2 = vld [vmem:[%s4672_s2 + $0x54] ss:$8 sps:$4 sm:$0xff]  }
  0x1c   :  { %3409 = vmatpush3.bf16.msra.mxu0 %v3475_v11  ;;  %3447 = vmatpush3.bf16.msra.mxu1 %v3474_v10  ;;  %v3355_v46 = vpack.c.bf16 %v76_v42, %v76_v42  ;;  %v3356_v47 = vpack.c.bf16 %v84_v43, %v84_v43  ;;  %v79_v48 = vsel %vm73_vm1, %v77_v37, %v78_v38  ;;  %v85_v49 = vsel %vm73_vm1, %v78_v38, 0.0  ;;  %v3502_v3 = vld [vmem:[%s4672_s2 + $0x50] ss:$8 sps:$4 sm:$0xff]   ;;  %v3507_v4 = vld [vmem:[%s4672_s2 + $0x44] ss:$8 sps:$4 sm:$0xff]  }
  0x1d   :  { %3410 = vmatprep.subr.bf16.mxu0 %v3476_v12  ;;  %3448 = vmatprep.subr.bf16.mxu1 %v3477_v13  ;;  %v66_v50 = vsel %vm60_vm0, %v64_v39, %v65_v36  ;;  %v72_v51 = vsel %vm60_vm0, 0.0, %v64_v39  ;;  %102 = vst [vmem:[#allocation2] sm:$0xf] %v3351_v44  ;;  %103 = vst [vmem:[#allocation2 + $0x18] sm:$0xf] %v3352_v45  ;;  %v3357_v52 = vpack.c.bf16 %v79_v48, %v79_v48 }
  0x1e   :  { %122 = vst [vmem:[#allocation2 + $0x8] sm:$0xf] %v3355_v46  ;;  %123 = vst [vmem:[#allocation2 + $0x20] sm:$0xf] %v3356_v47  ;;  %v3358_v53 = vpack.c.bf16 %v85_v49, %v85_v49  ;;  %v3353_v54 = vpack.c.bf16 %v72_v51, %v72_v51  ;;  %v3354_v55 = vpack.c.bf16 %v66_v50, %v66_v50  ;;  %v3488_v56 = vld [vmem:[#allocation2 + $0x4] ss:$24 sps:$4 sm:$0xff]  }
  0x1f   :  { %124 = vst [vmem:[#allocation2 + $0x38] sm:$0xf] %v3357_v52  ;;  %397 = vmatprep.mubr.bf16.mxu0 %v3488_v56  ;;  %v3493_v60 = vld [vmem:[#allocation2 + $0x34] ss:$24 sps:$4 sm:$0xff]   ;;  %v3505_v5 = vld [vmem:[%s4672_s2 + $0x40] ss:$8 sps:$4 sm:$0xff]  }
  0x20   :  { %3411 = vmatpush3.bf16.msra.mxu0 %v3478_v14  ;;  %3449 = vmatpush3.bf16.msra.mxu1 %v3477_v13  ;;  %125 = vst [vmem:[#allocation2 + $0x50] sm:$0xf] %v3358_v53  ;;  %104 = vst [vmem:[#allocation2 + $0x30] sm:$0xf] %v3353_v54  ;;  %v3510_v6 = vld [vmem:[%s4672_s2 + $0x34] ss:$8 sps:$4 sm:$0xff]  }
  0x21   :  { %3412 = vmatprep.subr.bf16.mxu0 %v3479_v15  ;;  %3450 = vmatprep.subr.bf16.mxu1 %v3480_v16  ;;  %105 = vst [vmem:[#allocation2 + $0x48] sm:$0xf] %v3354_v55  ;;  %v3508_v7 = vld [vmem:[%s4672_s2 + $0x30] ss:$8 sps:$4 sm:$0xff]   ;;  %v3513_v8 = vld [vmem:[%s4672_s2 + $0x24] ss:$8 sps:$4 sm:$0xff]  }
  0x22   :  { %v3511_v9 = vld [vmem:[%s4672_s2 + $0x20] ss:$8 sps:$4 sm:$0xff]   ;;  %v3516_v10 = vld [vmem:[%s4672_s2 + $0x14] ss:$8 sps:$4 sm:$0xff]   ;;  %v3514_v11 = vld [vmem:[%s4672_s2 + $0x10] ss:$8 sps:$4 sm:$0xff]  }
  0x23   :  { %v3519_v12 = vld [vmem:[%s4672_s2 + $0x4] ss:$8 sps:$4 sm:$0xff]   ;;  %v3517_v13 = vld [vmem:[%s4672_s2] ss:$8 sps:$4 sm:$0xff]   ;;  %v3522_v14 = vld [vmem:[%s4672_s2 + $0x174] ss:$8 sps:$4 sm:$0xff]  }
  0x24   :  { %3413 = vmatpush3.bf16.msra.mxu0 %v3481_v17  ;;  %3451 = vmatpush3.bf16.msra.mxu1 %v3480_v16  ;;  %v3491_v58 = vld [vmem:[#allocation2] ss:$24 sps:$4 sm:$0xff]   ;;  %v3525_v16 = vld [vmem:[%s4672_s2 + $0xf4] ss:$8 sps:$4 sm:$0xff]   ;;  %v3540_v26 = vld [vmem:[%s4672_s2 + $0x144] ss:$8 sps:$4 sm:$0xff]  }
  0x25   :  { %3414 = vmatprep.subr.bf16.mxu0 %v3482_v18  ;;  %3452 = vmatprep.subr.bf16.mxu1 %v3483_v19  ;;  %v3490_v57 = vld [vmem:[#allocation2 + $0x8] ss:$24 sps:$4 sm:$0xff]   ;;  %v3520_v15 = vld [vmem:[%s4672_s2 + $0x170] ss:$8 sps:$4 sm:$0xff]   ;;  %v3528_v18 = vld [vmem:[%s4672_s2 + $0x164] ss:$8 sps:$4 sm:$0xff]  }
  0x26   :  { %3456 = vmatprep.mubr.bf16.mxu1 %v3490_v57  ;;  %v3523_v17 = vld [vmem:[%s4672_s2 + $0xf0] ss:$8 sps:$4 sm:$0xff]   ;;  %v3537_v24 = vld [vmem:[%s4672_s2 + $0xd4] ss:$8 sps:$4 sm:$0xff]   ;;  %v3538_v27 = vld [vmem:[%s4672_s2 + $0x140] ss:$8 sps:$4 sm:$0xff]  }
  0x27   :  { %v3492_v59 = vld [vmem:[#allocation2 + $0x38] ss:$24 sps:$4 sm:$0xff]   ;;  %v3543_v28 = vld [vmem:[%s4672_s2 + $0xc4] ss:$8 sps:$4 sm:$0xff]   ;;  %v3541_v29 = vld [vmem:[%s4672_s2 + $0xc0] ss:$8 sps:$4 sm:$0xff]  }
  0x28   :  { %3415 = vmatpush3.bf16.msra.mxu0 %v3484_v20  ;;  %3453 = vmatpush3.bf16.msra.mxu1 %v3483_v19  ;;  %v3495_v61 = vld [vmem:[#allocation2 + $0x30] ss:$24 sps:$4 sm:$0xff]   ;;  %v3531_v20 = vld [vmem:[%s4672_s2 + $0xe4] ss:$8 sps:$4 sm:$0xff]   ;;  %v3549_v32 = vld [vmem:[%s4672_s2 + $0xb4] ss:$8 sps:$4 sm:$0xff]  }
  0x29   :  { %3416 = vmatprep.subr.bf16.mxu0 %v3485_v21  ;;  %3454 = vmatprep.subr.bf16.mxu1 %v3486_v22  ;;  %v3526_v19 = vld [vmem:[%s4672_s2 + $0x160] ss:$8 sps:$4 sm:$0xff]   ;;  %v3532_v23 = vld [vmem:[%s4672_s2 + $0x150] ss:$8 sps:$4 sm:$0xff]   ;;  %v3552_v34 = vld [vmem:[%s4672_s2 + $0x124] ss:$8 sps:$4 sm:$0xff]  }
  0x2a   :  { %v3529_v21 = vld [vmem:[%s4672_s2 + $0xe0] ss:$8 sps:$4 sm:$0xff]   ;;  %v3535_v25 = vld [vmem:[%s4672_s2 + $0xd0] ss:$8 sps:$4 sm:$0xff]   ;;  %v3555_v36 = vld [vmem:[%s4672_s2 + $0xa4] ss:$8 sps:$4 sm:$0xff]  }
  0x2b   :  { %v3544_v31 = vld [vmem:[%s4672_s2 + $0x130] ss:$8 sps:$4 sm:$0xff]   ;;  %v3550_v35 = vld [vmem:[%s4672_s2 + $0x120] ss:$8 sps:$4 sm:$0xff]   ;;  %v3558_v39 = vld [vmem:[%s4672_s2 + $0x114] ss:$8 sps:$4 sm:$0xff]  }
  0x2c   :  { %3417 = vmatpush3.bf16.msra.mxu0 %v3487_v30  ;;  %3455 = vmatpush3.bf16.msra.mxu1 %v3486_v22  ;;  %v3534_v22 = vld [vmem:[%s4672_s2 + $0x154] ss:$8 sps:$4 sm:$0xff]   ;;  %v3547_v33 = vld [vmem:[%s4672_s2 + $0xb0] ss:$8 sps:$4 sm:$0xff]   ;;  %v3553_v37 = vld [vmem:[%s4672_s2 + $0xa0] ss:$8 sps:$4 sm:$0xff]  }
  0x2d   :  { %931 = vmatprep.subr.bf16.mxu0 %v3498_v62  ;;  %984 = vmatprep.subr.bf16.mxu1 %v3522_v14  ;;  %v3546_v30 = vld [vmem:[%s4672_s2 + $0x134] ss:$8 sps:$4 sm:$0xff]   ;;  %v3556_v38 = vld [vmem:[%s4672_s2 + $0x110] ss:$8 sps:$4 sm:$0xff]   ;;  %v3564_v42 = vld [vmem:[%s4672_s2 + $0x104] ss:$8 sps:$4 sm:$0xff]  }
  0x2e   :  { %v3559_v40 = vld [vmem:[%s4672_s2 + $0x90] ss:$8 sps:$4 sm:$0xff]   ;;  %v3561_v41 = vld [vmem:[%s4672_s2 + $0x94] ss:$8 sps:$4 sm:$0xff]   ;;  %v3567_v43 = vld [vmem:[%s4672_s2 + $0x84] ss:$8 sps:$4 sm:$0xff]  }
  0x2f   :  { %398 = vmatmul.mubr.bf16.vlgmr.msra.gmra.mxu0 %v3491_v58  ;;  %3457 = vmatmul.mubr.bf16.vlgmr.msra.gmra.mxu1 %v3492_v59  ;;  %v3562_v44 = vld [vmem:[%s4672_s2 + $0x100] ss:$8 sps:$4 sm:$0xff]   ;;  %v4069_v46 = vmov 0  }
  0x30   :  { %405 = vmatprep.mubr.bf16.mxu0 %v3493_v60  ;;  %932 = vmatpush1.bf16.msra.mxu0 %v3496_v63  ;;  %v3565_v45 = vld [vmem:[%s4672_s2 + $0x80] ss:$8 sps:$4 sm:$0xff]  }
  0x31   :  { %933 = vmatprep.subr.bf16.mxu0 %v3501_v0  ;;  %985 = vmatpush1.bf16.msra.mxu1 %v3520_v15  ;;  %v3002_v50 = vld [vmem:[%s4674_s4] ss:$0 sm:$0xff] }
  0x32   :  { %986 = vmatprep.subr.bf16.mxu1 %v3528_v18  ;;  %1016 = vmatprep.mubr.bf16.mxu1 %v4069_v46 }
  0x34   :  { %934 = vmatpush1.bf16.msra.mxu0 %v3499_v1 }
  0x35   :  { %935 = vmatprep.subr.bf16.mxu0 %v3504_v2  ;;  %987 = vmatpush1.bf16.msra.mxu1 %v3526_v19 }
  0x36   :  { %988 = vmatprep.subr.bf16.mxu1 %v3534_v22 }
  0x37   :  { %406 = vmatmul.mubr.bf16.gmra.mxu0 %v3495_v61 }
  0x38   :  { %936 = vmatpush1.bf16.msra.mxu0 %v3502_v3 }
  0x39   :  { %937 = vmatprep.subr.bf16.mxu0 %v3507_v4  ;;  %989 = vmatpush1.bf16.msra.mxu1 %v3532_v23 }
  0x3a   :  { %990 = vmatprep.subr.bf16.mxu1 %v3540_v26 }
  0x3c   :  { %938 = vmatpush1.bf16.msra.mxu0 %v3505_v5 }
  0x3d   :  { %939 = vmatprep.subr.bf16.mxu0 %v3510_v6  ;;  %991 = vmatpush1.bf16.msra.mxu1 %v3538_v27 }
  0x3e   :  { %992 = vmatprep.subr.bf16.mxu1 %v3546_v30 }
  0x40   :  { %940 = vmatpush1.bf16.msra.mxu0 %v3508_v7 }
  0x41   :  { %941 = vmatprep.subr.bf16.mxu0 %v3513_v8  ;;  %993 = vmatpush1.bf16.msra.mxu1 %v3544_v31 }
  0x42   :  { %994 = vmatprep.subr.bf16.mxu1 %v3552_v34 }
  0x44   :  { %942 = vmatpush1.bf16.msra.mxu0 %v3511_v9 }
  0x45   :  { %943 = vmatprep.subr.bf16.mxu0 %v3516_v10  ;;  %995 = vmatpush1.bf16.msra.mxu1 %v3550_v35 }
  0x46   :  { %996 = vmatprep.subr.bf16.mxu1 %v3558_v39 }
  0x48   :  { %944 = vmatpush1.bf16.msra.mxu0 %v3514_v11 }
  0x49   :  { %945 = vmatprep.subr.bf16.mxu0 %v3519_v12  ;;  %997 = vmatpush1.bf16.msra.mxu1 %v3556_v38 }
  0x4a   :  { %998 = vmatprep.subr.bf16.mxu1 %v3564_v42 }
  0x4c   :  { %946 = vmatpush1.bf16.msra.mxu0 %v3517_v13 }
  0x4d   :  { %947 = vmatprep.subr.bf16.mxu0 %v3525_v16  ;;  %999 = vmatpush1.bf16.msra.mxu1 %v3562_v44 }
  0x50   :  { %948 = vmatpush2.bf16.msra.mxu0 %v3523_v17 }
  0x51   :  { %949 = vmatprep.subr.bf16.mxu0 %v3531_v20 }
  0x54   :  { %950 = vmatpush2.bf16.msra.mxu0 %v3529_v21 }
  0x55   :  { %951 = vmatprep.subr.bf16.mxu0 %v3537_v24 }
  0x58   :  { %952 = vmatpush2.bf16.msra.mxu0 %v3535_v25 }
  0x59   :  { %953 = vmatprep.subr.bf16.mxu0 %v3543_v28 }
  0x5c   :  { %954 = vmatpush2.bf16.msra.mxu0 %v3541_v29 }
  0x5d   :  { %955 = vmatprep.subr.bf16.mxu0 %v3549_v32 }
  0x60   :  { %956 = vmatpush2.bf16.msra.mxu0 %v3547_v33 }
  0x61   :  { %957 = vmatprep.subr.bf16.mxu0 %v3555_v36 }
  0x64   :  { %958 = vmatpush2.bf16.msra.mxu0 %v3553_v37 }
  0x65   :  { %959 = vmatprep.subr.bf16.mxu0 %v3561_v41 }
  0x68   :  { %960 = vmatpush2.bf16.msra.mxu0 %v3559_v40 }
  0x69   :  { %961 = vmatprep.subr.bf16.mxu0 %v3567_v43 }
  0x6c   :  { %962 = vmatpush2.bf16.msra.mxu0 %v3565_v45 }
  0xef   :  { %v3418_v47 = vpop.f32.mrf.mxu0  ;;  %v3458_v48 = vpop.f32.mrf.mxu1 }
  0xf1   :  { %v3419_v49 = vpop.f32.mrf.mxu0  ;;  %v448_v52 = vpop.f32.mrf.mxu1 }
  0xf2   :  { %v3420_v51 = vadd.f32 %v3419_v49, %v3418_v47 }
  0xf3   :  { %v3421_v53 = vpop.f32.mrf.mxu0  ;;  %v3459_v55 = vpop.f32.mrf.mxu1 }
  0xf4   :  { %v400_v54 = vadd.f32 %v3420_v51, %v3002_v50 }
  0xf5   :  { %v3422_v56 = vpop.f32.mrf.mxu0  ;;  %v451_v62 = vpop.f32.mrf.mxu1 }
  0xf6   :  { %v449_v57 = vadd.f32 %v448_v52, %v400_v54  ;;  %v3423_v58 = vadd.f32 %v3422_v56, %v3421_v53 }
  0xf7   :  { %v3424_v59 = vpop.f32.mrf.mxu0 }
  0xf8   :  { %v3033_v60 = vmul.f32 -1.442695, %v449_v57  ;;  %v403_v61 = vadd.f32 %v3423_v58, %v3002_v50 }
  0xf9   :  { %v3425_v63 = vpop.f32.mrf.mxu0 }
  0xfa   :  { %3864 = vpow2.f32 %v3033_v60  ;;  %v452_v0 = vadd.f32 %v451_v62, %v403_v61  ;;  %v3426_v1 = vadd.f32 %v3425_v63, %v3424_v59 }
  0xfb   :  { %v3427_v2 = vpop.f32.mrf.mxu0 }
  0xfc   :  { %v3034_v3 = vmul.f32 -1.442695, %v452_v0  ;;  %v408_v4 = vadd.f32 %v3426_v1, %v3002_v50 }
  0xfd   :  { %v3428_v5 = vpop.f32.mrf.mxu0 }
  0xfe   :  { %3866 = vpow2.f32 %v3034_v3  ;;  %v457_v6 = vadd.f32 %v3458_v48, %v408_v4  ;;  %v3429_v7 = vadd.f32 %v3428_v5, %v3427_v2  ;;  %v3578_v5 = vld [vmem:[#allocation3 + $0x2e4] ss:$16 sps:$4 sm:$0xff]  }
  0xff   :  { %2548 = vmatprep.subr.bf16.mxu0 %v3578_v5  ;;  %v3672_v5 = vld [vmem:[#allocation3 + $0x100] ss:$16 sps:$4 sm:$0xff]  }
 0x100   :  { %v3035_v8 = vmul.f32 -1.442695, %v457_v6  ;;  %v411_v9 = vadd.f32 %v3429_v7, %v3002_v50  ;;  %v3581_v7 = vld [vmem:[#allocation3 + $0x2c4] ss:$16 sps:$4 sm:$0xff]  }
 0x102   :  { %3868 = vpow2.f32 %v3035_v8  ;;  %v460_v10 = vadd.f32 %v3459_v55, %v411_v9  ;;  %v3579_v8 = vld [vmem:[#allocation3 + $0x2c0] ss:$16 sps:$4 sm:$0xff]   ;;  %v3584_v9 = vld [vmem:[#allocation3 + $0xe4] ss:$16 sps:$4 sm:$0xff]  }
 0x103   :  { %2495 = vmatprep.subr.bf16.mxu1 %v3584_v9 }
 0x104   :  { %v3036_v11 = vmul.f32 -1.442695, %v460_v10 }
 0x106   :  { %3870 = vpow2.f32 %v3036_v11  ;;  %v3587_v11 = vld [vmem:[#allocation3 + $0x2a4] ss:$16 sps:$4 sm:$0xff]  }
 0x107   :  { %v3865_v12 = vpop.eup %3864 }
 0x108   :  { %v475_v13 = vadd.f32 1.0, %v3865_v12  ;;  %v3585_v12 = vld [vmem:[#allocation3 + $0x2a0] ss:$16 sps:$4 sm:$0xff]  }
 0x10a   :  { %3872 = vrcp.f32 %v475_v13  ;;  %v3588_v13 = vld [vmem:[#allocation3 + $0xc0] ss:$16 sps:$4 sm:$0xff]  }
 0x10b   :  { %v3867_v14 = vpop.eup %3866 }
 0x10c   :  { %v476_v15 = vadd.f32 1.0, %v3867_v14  ;;  %v3593_v14 = vld [vmem:[#allocation3 + $0x284] ss:$16 sps:$4 sm:$0xff]  }
 0x10e   :  { %3874 = vrcp.f32 %v476_v15  ;;  %v3591_v15 = vld [vmem:[#allocation3 + $0x280] ss:$16 sps:$4 sm:$0xff]  }
 0x10f   :  { %v3869_v16 = vpop.eup %3868 }
 0x110   :  { %v477_v17 = vadd.f32 1.0, %v3869_v16  ;;  %v3596_v16 = vld [vmem:[#allocation3 + $0xa4] ss:$16 sps:$4 sm:$0xff]  }
 0x112   :  { %3876 = vrcp.f32 %v477_v17  ;;  %v3594_v17 = vld [vmem:[#allocation3 + $0xa0] ss:$16 sps:$4 sm:$0xff]  }
 0x113   :  { %v3871_v18 = vpop.eup %3870 }
 0x114   :  { %v478_v19 = vadd.f32 1.0, %v3871_v18  ;;  %v3599_v18 = vld [vmem:[#allocation3 + $0x264] ss:$16 sps:$4 sm:$0xff]  }
 0x116   :  { %3878 = vrcp.f32 %v478_v19  ;;  %v3597_v19 = vld [vmem:[#allocation3 + $0x260] ss:$16 sps:$4 sm:$0xff]  }
 0x117   :  { %v3873_v20 = vpop.eup %3872 }
 0x118   :  { %v487_v22 = vmul.f32 %v3873_v20, %v449_v57  ;;  %v3602_v20 = vld [vmem:[#allocation3 + $0x84] ss:$16 sps:$4 sm:$0xff]  }
 0x11b   :  { %v3875_v21 = vpop.eup %3874 }
 0x11c   :  { %v488_v23 = vmul.f32 %v3875_v21, %v452_v0  ;;  %v3600_v21 = vld [vmem:[#allocation3 + $0x80] ss:$16 sps:$4 sm:$0xff]  }
 0x11e   :  { %v3394_v24 = vpack.c.bf16 %v488_v23, %v487_v22  ;;  %v3605_v22 = vld [vmem:[#allocation3 + $0x244] ss:$16 sps:$4 sm:$0xff]   ;;  %v3603_v23 = vld [vmem:[#allocation3 + $0x240] ss:$16 sps:$4 sm:$0xff]  }
 0x11f   :  { %v3877_v25 = vpop.eup %3876 }
 0x120   :  { %3395 = vst [vmem:[%s4677_s7] sm:$0xff] %v3394_v24   ;;  %v489_v27 = vmul.f32 %v3877_v25, %v457_v6  ;;  %v3576_v6 = vld [vmem:[#allocation3 + $0x2e0] ss:$16 sps:$4 sm:$0xff]   ;;  %v3608_v24 = vld [vmem:[#allocation3 + $0x64] ss:$16 sps:$4 sm:$0xff]  }
 0x121   :  { %v3606_v25 = vld [vmem:[#allocation3 + $0x60] ss:$16 sps:$4 sm:$0xff]  }
 0x123   :  { %v3879_v26 = vpop.eup %3878 }
 0x124   :  { %v490_v28 = vmul.f32 %v3879_v26, %v460_v10  ;;  %v3582_v10 = vld [vmem:[#allocation3 + $0xe0] ss:$16 sps:$4 sm:$0xff]   ;;  %v3611_v26 = vld [vmem:[#allocation3 + $0x224] ss:$16 sps:$4 sm:$0xff]  }
 0x126   :  { %v3399_v29 = vpack.c.bf16 %v490_v28, %v489_v27  ;;  %v3609_v27 = vld [vmem:[#allocation3 + $0x220] ss:$16 sps:$4 sm:$0xff]   ;;  %v3614_v28 = vld [vmem:[#allocation3 + $0x44] ss:$16 sps:$4 sm:$0xff]  }
 0x127   :  { %v511_v30 = vld [vmem:[%s4677_s7] sm:$0xf]  ;;  %v512_v31 = vld [vmem:[%s4677_s7 + $0x4] sm:$0xf] }
 0x128   :  { %v519_v32 = vunpack.c.l.bf16 %v511_v30  ;;  %v520_v33 = vunpack.c.l.bf16 %v512_v31  ;;  %515 = vst [vmem:[#allocation2 + $0x4] sm:$0xf] %v511_v30  ;;  %516 = vst [vmem:[#allocation2 + $0x1c] sm:$0xf] %v512_v31  ;;  %v3617_v30 = vld [vmem:[#allocation3 + $0x204] ss:$16 sps:$4 sm:$0xff]  }
 0x129   :  { %3401 = vst [vmem:[%s4677_s7 + $0x8] sm:$0xff] %v3399_v29   ;;  %v3612_v29 = vld [vmem:[#allocation3 + $0x40] ss:$16 sps:$4 sm:$0xff]  }
 0x12a   :  { %v527_v34 = vrot.slane %v519_v32, 7  ;;  %v528_v35 = vrot.slane %v520_v33, 7  ;;  %v539_v36 = vrot.slane %v519_v32, 1  ;;  %v540_v37 = vrot.slane %v520_v33, 1  ;;  %v3615_v31 = vld [vmem:[#allocation3 + $0x200] ss:$16 sps:$4 sm:$0xff]  }
 0x12b   :  { %v3620_v32 = vld [vmem:[#allocation3 + $0x24] ss:$16 sps:$4 sm:$0xff]   ;;  %v3618_v33 = vld [vmem:[#allocation3 + $0x20] ss:$16 sps:$4 sm:$0xff]  }
 0x12c   :  { %v529_v38 = vsel %vm60_vm0, %v527_v34, %v528_v35  ;;  %v537_v39 = vsel %vm60_vm0, 0.0, %v527_v34  ;;  %v541_v40 = vsel %vm73_vm1, %v539_v36, %v540_v37  ;;  %v549_v41 = vsel %vm73_vm1, %v540_v37, 0.0  ;;  %v3623_v34 = vld [vmem:[#allocation3 + $0x3e4] ss:$16 sps:$4 sm:$0xff]   ;;  %v3621_v35 = vld [vmem:[#allocation3 + $0x3e0] ss:$16 sps:$4 sm:$0xff]  }
 0x12d   :  { %v3363_v42 = vpack.c.bf16 %v537_v39, %v537_v39  ;;  %v3367_v43 = vpack.c.bf16 %v541_v40, %v541_v40  ;;  %v3368_v44 = vpack.c.bf16 %v549_v41, %v549_v41  ;;  %v3364_v45 = vpack.c.bf16 %v529_v38, %v529_v38  ;;  %v3626_v36 = vld [vmem:[#allocation3 + $0x4] ss:$16 sps:$4 sm:$0xff]   ;;  %v3624_v37 = vld [vmem:[#allocation3] ss:$16 sps:$4 sm:$0xff]  }
 0x12e   :  { %v3629_v38 = vld [vmem:[#allocation3 + $0x3c4] ss:$16 sps:$4 sm:$0xff]   ;;  %v3627_v39 = vld [vmem:[#allocation3 + $0x3c0] ss:$16 sps:$4 sm:$0xff]  }
 0x12f   :  { %567 = vst [vmem:[#allocation2] sm:$0xf] %v3363_v42  ;;  %587 = vst [vmem:[#allocation2 + $0x8] sm:$0xf] %v3367_v43  ;;  %v3570_v0 = vld [vmem:[#allocation2 + $0x4] ss:$24 sps:$4 sm:$0xff]  }
 0x130   :  { %588 = vst [vmem:[#allocation2 + $0x20] sm:$0xf] %v3368_v44  ;;  %568 = vst [vmem:[#allocation2 + $0x18] sm:$0xf] %v3364_v45  ;;  %v513_v47 = vld [vmem:[%s4677_s7 + $0x8] sm:$0xf]  ;;  %963 = vmatprep.mubr.bf16.mxu0 %v3570_v0 }
 0x131   :  { %v514_v48 = vld [vmem:[%s4677_s7 + $0xc] sm:$0xf]  ;;  %517 = vst [vmem:[#allocation2 + $0x34] sm:$0xf] %v513_v47  ;;  %v521_v49 = vunpack.c.l.bf16 %v513_v47  ;;  %v3632_v40 = vld [vmem:[#allocation3 + $0x1e4] ss:$16 sps:$4 sm:$0xff]  }
 0x132   :  { %518 = vst [vmem:[#allocation2 + $0x4c] sm:$0xf] %v514_v48  ;;  %v522_v50 = vunpack.c.l.bf16 %v514_v48  ;;  %v3630_v41 = vld [vmem:[#allocation3 + $0x1e0] ss:$16 sps:$4 sm:$0xff]   ;;  %v3635_v42 = vld [vmem:[#allocation3 + $0x3a4] ss:$16 sps:$4 sm:$0xff]  }
 0x133   :  { %v530_v51 = vrot.slane %v521_v49, 7  ;;  %v542_v53 = vrot.slane %v521_v49, 1  ;;  %v3633_v43 = vld [vmem:[#allocation3 + $0x3a0] ss:$16 sps:$4 sm:$0xff]   ;;  %v3638_v44 = vld [vmem:[#allocation3 + $0x1c4] ss:$16 sps:$4 sm:$0xff]  }
 0x134   :  { %v531_v52 = vrot.slane %v522_v50, 7  ;;  %v543_v54 = vrot.slane %v522_v50, 1  ;;  %v3636_v45 = vld [vmem:[#allocation3 + $0x1c0] ss:$16 sps:$4 sm:$0xff]   ;;  %v3641_v47 = vld [vmem:[#allocation3 + $0x384] ss:$16 sps:$4 sm:$0xff]  }
 0x135   :  { %v538_v56 = vsel %vm60_vm0, 0.0, %v530_v51  ;;  %v3639_v48 = vld [vmem:[#allocation3 + $0x380] ss:$16 sps:$4 sm:$0xff]   ;;  %v3644_v49 = vld [vmem:[#allocation3 + $0x1a4] ss:$16 sps:$4 sm:$0xff]  }
 0x136   :  { %v532_v55 = vsel %vm60_vm0, %v530_v51, %v531_v52  ;;  %v544_v57 = vsel %vm73_vm1, %v542_v53, %v543_v54  ;;  %v550_v58 = vsel %vm73_vm1, %v543_v54, 0.0  ;;  %v3365_v59 = vpack.c.bf16 %v538_v56, %v538_v56  ;;  %v3642_v50 = vld [vmem:[#allocation3 + $0x1a0] ss:$16 sps:$4 sm:$0xff]   ;;  %v3647_v51 = vld [vmem:[#allocation3 + $0x364] ss:$16 sps:$4 sm:$0xff]  }
 0x137   :  { %v3366_v60 = vpack.c.bf16 %v532_v55, %v532_v55  ;;  %v3369_v61 = vpack.c.bf16 %v544_v57, %v544_v57  ;;  %v3370_v62 = vpack.c.bf16 %v550_v58, %v550_v58  ;;  %v3568_v63 = vld [vmem:[#allocation2] ss:$24 sps:$4 sm:$0xff]   ;;  %v3650_v53 = vld [vmem:[#allocation3 + $0x184] ss:$16 sps:$4 sm:$0xff]  }
 0x138   :  { %569 = vst [vmem:[#allocation2 + $0x30] sm:$0xf] %v3365_v59  ;;  %v3571_v1 = vld [vmem:[#allocation2 + $0x8] ss:$24 sps:$4 sm:$0xff]   ;;  %964 = vmatmul.mubr.bf16.vlgmr.msra.gmra.mxu0 %v3568_v63  ;;  %v3653_v55 = vld [vmem:[#allocation3 + $0x344] ss:$16 sps:$4 sm:$0xff]  }
 0x139   :  { %570 = vst [vmem:[#allocation2 + $0x48] sm:$0xf] %v3366_v60  ;;  %589 = vst [vmem:[#allocation2 + $0x38] sm:$0xf] %v3369_v61  ;;  %1017 = vmatmul.mubr.bf16.vlgmr.msra.gmra.mxu1 %v3571_v1  ;;  %v3572_v2 = vld [vmem:[#allocation2 + $0x34] ss:$24 sps:$4 sm:$0xff]   ;;  %2549 = vmatpush1.bf16.msra.mxu0 %v3576_v6 }
 0x13a   :  { %590 = vst [vmem:[#allocation2 + $0x50] sm:$0xf] %v3370_v62  ;;  %1026 = vmatprep.mubr.bf16.mxu1 %v4069_v46  ;;  %973 = vmatprep.mubr.bf16.mxu0 %v3572_v2  ;;  %v3590_v46 = vld [vmem:[#allocation3 + $0xc4] ss:$16 sps:$4 sm:$0xff]   ;;  %v3645_v52 = vld [vmem:[#allocation3 + $0x360] ss:$16 sps:$4 sm:$0xff]  }
 0x13b   :  { %2550 = vmatprep.subr.bf16.mxu0 %v3581_v7  ;;  %2496 = vmatpush1.bf16.msra.mxu1 %v3582_v10  ;;  %v3648_v54 = vld [vmem:[#allocation3 + $0x180] ss:$16 sps:$4 sm:$0xff]   ;;  %v3656_v57 = vld [vmem:[#allocation3 + $0x164] ss:$16 sps:$4 sm:$0xff]   ;;  %v649_v7 = vlaneseq }
 0x13c   :  { %2497 = vmatprep.subr.bf16.mxu1 %v3590_v46  ;;  %v3651_v56 = vld [vmem:[#allocation3 + $0x340] ss:$16 sps:$4 sm:$0xff]   ;;  %v3659_v59 = vld [vmem:[#allocation3 + $0x324] ss:$16 sps:$4 sm:$0xff]  }
 0x13d   :  { %2551 = vmatpush1.bf16.msra.mxu0 %v3579_v8  ;;  %v3654_v58 = vld [vmem:[#allocation3 + $0x160] ss:$16 sps:$4 sm:$0xff]   ;;  %v3662_v61 = vld [vmem:[#allocation3 + $0x144] ss:$16 sps:$4 sm:$0xff]   ;;  %v4391_v8 = vshrl.u32 %v649_v7, 7 }
 0x13e   :  { %2552 = vmatprep.subr.bf16.mxu0 %v3587_v11  ;;  %v3657_v60 = vld [vmem:[#allocation3 + $0x320] ss:$16 sps:$4 sm:$0xff]   ;;  %v3665_v63 = vld [vmem:[#allocation3 + $0x304] ss:$16 sps:$4 sm:$0xff]  }
 0x13f   :  { %2498 = vmatpush1.bf16.msra.mxu1 %v3588_v13  ;;  %v3660_v62 = vld [vmem:[#allocation3 + $0x140] ss:$16 sps:$4 sm:$0xff]   ;;  %v3668_v1 = vld [vmem:[#allocation3 + $0x124] ss:$16 sps:$4 sm:$0xff]   ;;  %v651_v9 = vsub.s32 0, %v4391_v8  ;;  %v655_v11 = vsub.s32 1, %v4391_v8 }
 0x140   :  { %v3575_v4 = vld [vmem:[#allocation2 + $0x30] ss:$24 sps:$4 sm:$0xff]   ;;  %2499 = vmatprep.subr.bf16.mxu1 %v3596_v16  ;;  %v3680_v6 = vld [vmem:[#allocation3 + $0x4e4] ss:$16 sps:$4 sm:$0xff]   ;;  %v647_v10 = vld [vmem:[%s4675_s5] sm:$0x3] }
 0x141   :  { %v3574_v3 = vld [vmem:[#allocation2 + $0x38] ss:$24 sps:$4 sm:$0xff]   ;;  %974 = vmatmul.mubr.bf16.gmra.mxu0 %v3575_v4  ;;  %v3674_v4 = vld [vmem:[#allocation3 + $0x104] ss:$16 sps:$4 sm:$0xff]   ;;  %v656_v46 = vrot.slane %v647_v10, %v655_v11 }
 0x142   :  { %1027 = vmatmul.mubr.bf16.gmra.mxu1 %v3574_v3  ;;  %2553 = vmatpush1.bf16.msra.mxu0 %v3585_v12  ;;  %v3663_v0 = vld [vmem:[#allocation3 + $0x300] ss:$16 sps:$4 sm:$0xff]   ;;  %v3671_v3 = vld [vmem:[#allocation3 + $0xec] ss:$16 sps:$4 sm:$0xff]   ;;  %v652_v12 = vrot.slane %v647_v10, %v651_v9 }
 0x143   :  { %2554 = vmatprep.subr.bf16.mxu0 %v3593_v14  ;;  %2500 = vmatpush1.bf16.msra.mxu1 %v3594_v17  ;;  %v3666_v2 = vld [vmem:[#allocation3 + $0x120] ss:$16 sps:$4 sm:$0xff]  }
 0x144   :  { %2501 = vmatprep.subr.bf16.mxu1 %v3602_v20 }
 0x146   :  { %2555 = vmatpush1.bf16.msra.mxu0 %v3591_v15 }
 0x147   :  { %2556 = vmatprep.subr.bf16.mxu0 %v3599_v18  ;;  %2502 = vmatpush1.bf16.msra.mxu1 %v3600_v21 }
 0x148   :  { %2503 = vmatprep.subr.bf16.mxu1 %v3608_v24 }
 0x14a   :  { %2557 = vmatpush1.bf16.msra.mxu0 %v3597_v19 }
 0x14b   :  { %2558 = vmatprep.subr.bf16.mxu0 %v3605_v22  ;;  %2504 = vmatpush1.bf16.msra.mxu1 %v3606_v25 }
 0x14c   :  { %2505 = vmatprep.subr.bf16.mxu1 %v3614_v28 }
 0x14e   :  { %2559 = vmatpush1.bf16.msra.mxu0 %v3603_v23 }
 0x14f   :  { %2560 = vmatprep.subr.bf16.mxu0 %v3611_v26  ;;  %2506 = vmatpush1.bf16.msra.mxu1 %v3612_v29 }
 0x150   :  { %2507 = vmatprep.subr.bf16.mxu1 %v3620_v32 }
 0x152   :  { %2561 = vmatpush1.bf16.msra.mxu0 %v3609_v27 }
 0x153   :  { %2562 = vmatprep.subr.bf16.mxu0 %v3617_v30  ;;  %2508 = vmatpush1.bf16.msra.mxu1 %v3618_v33 }
 0x154   :  { %2509 = vmatprep.subr.bf16.mxu1 %v3626_v36 }
 0x156   :  { %2563 = vmatpush1.bf16.msra.mxu0 %v3615_v31 }
 0x157   :  { %2564 = vmatprep.subr.bf16.mxu0 %v3623_v34  ;;  %2510 = vmatpush1.bf16.msra.mxu1 %v3624_v37 }
 0x158   :  { %2511 = vmatprep.subr.bf16.mxu1 %v3632_v40 }
 0x15a   :  { %2565 = vmatpush2.bf16.msra.mxu0 %v3621_v35 }
 0x15b   :  { %2566 = vmatprep.subr.bf16.mxu0 %v3629_v38  ;;  %2512 = vmatpush2.bf16.msra.mxu1 %v3630_v41 }
 0x15c   :  { %2513 = vmatprep.subr.bf16.mxu1 %v3638_v44 }
 0x15e   :  { %2567 = vmatpush2.bf16.msra.mxu0 %v3627_v39 }
 0x15f   :  { %2568 = vmatprep.subr.bf16.mxu0 %v3635_v42  ;;  %2514 = vmatpush2.bf16.msra.mxu1 %v3636_v45 }
 0x160   :  { %2515 = vmatprep.subr.bf16.mxu1 %v3644_v49 }
 0x162   :  { %2569 = vmatpush2.bf16.msra.mxu0 %v3633_v43 }
 0x163   :  { %2570 = vmatprep.subr.bf16.mxu0 %v3641_v47  ;;  %2516 = vmatpush2.bf16.msra.mxu1 %v3642_v50 }
 0x164   :  { %2517 = vmatprep.subr.bf16.mxu1 %v3650_v53 }
 0x166   :  { %2571 = vmatpush2.bf16.msra.mxu0 %v3639_v48 }
 0x167   :  { %2572 = vmatprep.subr.bf16.mxu0 %v3647_v51  ;;  %2518 = vmatpush2.bf16.msra.mxu1 %v3648_v54 }
 0x168   :  { %2519 = vmatprep.subr.bf16.mxu1 %v3656_v57 }
 0x16a   :  { %2573 = vmatpush2.bf16.msra.mxu0 %v3645_v52 }
 0x16b   :  { %2574 = vmatprep.subr.bf16.mxu0 %v3653_v55  ;;  %2520 = vmatpush2.bf16.msra.mxu1 %v3654_v58 }
 0x16c   :  { %2521 = vmatprep.subr.bf16.mxu1 %v3662_v61 }
 0x16e   :  { %2575 = vmatpush2.bf16.msra.mxu0 %v3651_v56 }
 0x16f   :  { %2576 = vmatprep.subr.bf16.mxu0 %v3659_v59  ;;  %2522 = vmatpush2.bf16.msra.mxu1 %v3660_v62 }
 0x170   :  { %2523 = vmatprep.subr.bf16.mxu1 %v3668_v1 }
 0x172   :  { %2577 = vmatpush2.bf16.msra.mxu0 %v3657_v60 }
 0x173   :  { %2578 = vmatprep.subr.bf16.mxu0 %v3665_v63  ;;  %2524 = vmatpush2.bf16.msra.mxu1 %v3666_v2 }
 0x174   :  { %2525 = vmatprep.subr.bf16.mxu1 %v3674_v4 }
 0x176   :  { %2579 = vmatpush2.bf16.msra.mxu0 %v3663_v0 }
 0x177   :  { %2654 = vmatprep.subr.bf16.mxu0 %v3671_v3  ;;  %2526 = vmatpush2.bf16.msra.mxu1 %v3672_v5 }
 0x178   :  { %2601 = vmatprep.subr.bf16.mxu1 %v3680_v6 }
 0x1f8   :  { %v965_v14 = vpop.f32.mrf.mxu0 }
 0x1f9   :  { %v1018_v13 = vpop.f32.mrf.mxu1  ;;  %v966_v15 = vadd.f32 %v965_v14, %v652_v12 }
 0x1fa   :  { %v967_v17 = vpop.f32.mrf.mxu0 }
 0x1fb   :  { %v1020_v16 = vpop.f32.mrf.mxu1  ;;  %v4402_v18 = vadd.f32 %v1018_v13, %v966_v15  ;;  %v968_v19 = vadd.f32 %v967_v17, %v656_v46 }
 0x1fc   :  { %v969_v21 = vpop.f32.mrf.mxu0 }
 0x1fd   :  { %v1022_v20 = vpop.f32.mrf.mxu1  ;;  %v3103_v22 = vmul.f32 -1.442695, %v4402_v18  ;;  %v4405_v23 = vadd.f32 %v1020_v16, %v968_v19  ;;  %v970_v24 = vadd.f32 %v969_v21, %v652_v12 }
 0x1fe   :  { %v971_v26 = vpop.f32.mrf.mxu0 }
 0x1ff   :  { %v1024_v25 = vpop.f32.mrf.mxu1  ;;  %3880 = vpow2.f32 %v3103_v22  ;;  %v3104_v27 = vmul.f32 -1.442695, %v4405_v23  ;;  %v4408_v28 = vadd.f32 %v1022_v20, %v970_v24  ;;  %v972_v29 = vadd.f32 %v971_v26, %v656_v46 }
 0x201   :  { %v975_v31 = vpop.f32.mrf.mxu0  ;;  %3882 = vpow2.f32 %v3104_v27  ;;  %v3105_v32 = vmul.f32 -1.442695, %v4408_v28  ;;  %v1025_v33 = vadd.f32 %v1024_v25, %v972_v29 }
 0x202   :  { %v1028_v30 = vpop.f32.mrf.mxu1  ;;  %v976_v34 = vadd.f32 %v975_v31, %v652_v12 }
 0x203   :  { %v977_v36 = vpop.f32.mrf.mxu0  ;;  %3884 = vpow2.f32 %v3105_v32  ;;  %v3106_v37 = vmul.f32 -1.442695, %v1025_v33 }
 0x204   :  { %v1030_v35 = vpop.f32.mrf.mxu1  ;;  %v1029_v38 = vadd.f32 %v1028_v30, %v976_v34  ;;  %v978_v39 = vadd.f32 %v977_v36, %v656_v46  ;;  %v3669_v30 = vld [vmem:[#allocation3 + $0xe8] ss:$16 sps:$4 sm:$0xff]  }
 0x205   :  { %v979_v41 = vpop.f32.mrf.mxu0  ;;  %3886 = vpow2.f32 %v3106_v37 }
 0x206   :  { %v1032_v40 = vpop.f32.mrf.mxu1  ;;  %v3107_v42 = vmul.f32 -1.442695, %v1029_v38  ;;  %v1031_v43 = vadd.f32 %v1030_v35, %v978_v39  ;;  %v980_v44 = vadd.f32 %v979_v41, %v652_v12 }
 0x207   :  { %v981_v45 = vpop.f32.mrf.mxu0 }
 0x208   :  { %3888 = vpow2.f32 %v3107_v42  ;;  %v3108_v47 = vmul.f32 -1.442695, %v1031_v43  ;;  %v4411_v48 = vadd.f32 %v1032_v40, %v980_v44  ;;  %v982_v49 = vadd.f32 %v981_v45, %v656_v46  ;;  %v1034_v50 = vpop.f32.mrf.mxu1 }
 0x20a   :  { %3890 = vpow2.f32 %v3108_v47  ;;  %v3109_v51 = vmul.f32 -1.442695, %v4411_v48  ;;  %v4414_v52 = vadd.f32 %v1034_v50, %v982_v49  ;;  %v3675_v47 = vld [vmem:[#allocation3 + $0xc8] ss:$16 sps:$4 sm:$0xff]  }
 0x20c   :  { %3892 = vpow2.f32 %v3109_v51  ;;  %v3110_v53 = vmul.f32 -1.442695, %v4414_v52  ;;  %v3881_v54 = vpop.eup %3880 }
 0x20d   :  { %v1061_v55 = vadd.f32 1.0, %v3881_v54 }
 0x20e   :  { %3894 = vpow2.f32 %v3110_v53  ;;  %v3883_v56 = vpop.eup %3882  ;;  %v3683_v53 = vld [vmem:[#allocation3 + $0xac] ss:$16 sps:$4 sm:$0xff]  }
 0x20f   :  { %3896 = vrcp.f32 %v1061_v55  ;;  %v1062_v57 = vadd.f32 1.0, %v3883_v56  ;;  %v3686_v56 = vld [vmem:[#allocation3 + $0x4c4] ss:$16 sps:$4 sm:$0xff]  }
 0x210   :  { %v3885_v58 = vpop.eup %3884 }
 0x211   :  { %3898 = vrcp.f32 %v1062_v57  ;;  %v1063_v59 = vadd.f32 1.0, %v3885_v58 }
 0x212   :  { %v3887_v60 = vpop.eup %3886 }
 0x213   :  { %3900 = vrcp.f32 %v1063_v59  ;;  %v1064_v61 = vadd.f32 1.0, %v3887_v60 }
 0x215   :  { %v3889_v62 = vpop.eup %3888  ;;  %3902 = vrcp.f32 %v1064_v61  ;;  %v3681_v61 = vld [vmem:[#allocation3 + $0xa8] ss:$16 sps:$4 sm:$0xff]  }
 0x216   :  { %v1065_v63 = vadd.f32 1.0, %v3889_v62 }
 0x217   :  { %v3891_v0 = vpop.eup %3890 }
 0x218   :  { %3904 = vrcp.f32 %v1065_v63  ;;  %v1066_v1 = vadd.f32 1.0, %v3891_v0 }
 0x219   :  { %v3893_v2 = vpop.eup %3892 }
 0x21a   :  { %3906 = vrcp.f32 %v1066_v1  ;;  %v1067_v3 = vadd.f32 1.0, %v3893_v2 }
 0x21b   :  { %v3895_v4 = vpop.eup %3894 }
 0x21c   :  { %3908 = vrcp.f32 %v1067_v3  ;;  %v1068_v5 = vadd.f32 1.0, %v3895_v4  ;;  %v3897_v6 = vpop.eup %3896  ;;  %v3689_v3 = vld [vmem:[#allocation3 + $0x8c] ss:$16 sps:$4 sm:$0xff]  }
 0x21d   :  { %v1085_v10 = vmul.f32 %v3897_v6, %v4402_v18 }
 0x21e   :  { %3910 = vrcp.f32 %v1068_v5  ;;  %v3899_v7 = vpop.eup %3898  ;;  %v3684_v5 = vld [vmem:[#allocation3 + $0x4c0] ss:$16 sps:$4 sm:$0xff]  }
 0x21f   :  { %v1086_v12 = vmul.f32 %v3899_v7, %v4405_v23  ;;  %v4427_v19 = vrot.slane %v1085_v10, 7  ;;  %v1169_v34 = vrot.slane %v1085_v10, 1 }
 0x220   :  { %v3901_v46 = vpop.eup %3900 }
 0x221   :  { %v3371_v13 = vpack.c.bf16 %v1086_v12, %v1085_v10  ;;  %v4423_v15 = vmul.f32 %v3901_v46, %v4408_v28  ;;  %v1146_v20 = vrot.slane %v1086_v12, 7  ;;  %v1165_v23 = vsel %vm60_vm0, 0.0, %v4427_v19  ;;  %v3692_v46 = vld [vmem:[#allocation3 + $0x4a4] ss:$16 sps:$4 sm:$0xff]  }
 0x222   :  { %v3903_v14 = vpop.eup %3902  ;;  %v1172_v39 = vrot.slane %v1086_v12, 1 }
 0x223   :  { %1117 = vst [vmem:[%s4678_s8] sm:$0xff] %v3371_v13  ;;  %1125 = vst [vmem:[#allocation2 + $0x8] sm:$0xff] %v3371_v13  ;;  %v4425_v16 = vmul.f32 %v3903_v14, %v1025_v33  ;;  %v1166_v24 = vsel %vm60_vm0, 0.0, %v1146_v20  ;;  %v4442_v28 = vpack.c.bf16 %v4423_v15, %v1085_v10  ;;  %v1147_v31 = vrot.slane %v4423_v15, 7  ;;  %v3677_v33 = vld [vmem:[#allocation3 + $0xcc] ss:$16 sps:$4 sm:$0xff]  }
 0x224   :  { %v3375_v26 = vpack.c.bf16 %v1166_v24, %v1165_v23  ;;  %v1170_v35 = vrot.slane %v4423_v15, 1  ;;  %v3693_v23 = vld [vmem:[#allocation3 + $0x68] ss:$16 sps:$4 sm:$0xff]  }
 0x225   :  { %v3905_v17 = vpop.eup %3904  ;;  %v3372_v18 = vpack.c.bf16 %v4425_v16, %v4423_v15  ;;  %v4445_v29 = vpack.c.bf16 %v4425_v16, %v1086_v12  ;;  %v1149_v32 = vrot.slane %v4425_v16, 7  ;;  %v1173_v40 = vrot.slane %v4425_v16, 1  ;;  %v3713_v16 = vld [vmem:[#allocation3 + $0xc] ss:$16 sps:$4 sm:$0xff]  }
 0x226   :  { %v4431_v22 = vmul.f32 %v3905_v17, %v1029_v38  ;;  %1217 = vst [vmem:[#allocation2] sm:$0xff] %v3375_v26  ;;  %v1148_v41 = vsel %vm60_vm0, %v4427_v19, %v1147_v31  ;;  %v4467_v44 = vsel %vm73_vm1, %v1169_v34, %v1170_v35  ;;  %v3687_v17 = vld [vmem:[#allocation3 + $0x88] ss:$16 sps:$4 sm:$0xff]   ;;  %v3704_v31 = vld [vmem:[#allocation3 + $0x464] ss:$16 sps:$4 sm:$0xff]  }
 0x227   :  { %v3907_v21 = vpop.eup %3906  ;;  %1118 = vst [vmem:[%s4678_s8 + $0x8] sm:$0xff] %v3372_v18  ;;  %1126 = vst [vmem:[#allocation2 + $0x20] sm:$0xff] %v3372_v18  ;;  %2580 = vmatprep.mubr.bf16.mxu0 %v4445_v29  ;;  %v1150_v42 = vsel %vm60_vm0, %v1146_v20, %v1149_v32  ;;  %v4506_v2 = vpack.c.bf16 %v1148_v41, %v4427_v19  ;;  %v3690_v18 = vld [vmem:[#allocation3 + $0x4a0] ss:$16 sps:$4 sm:$0xff]   ;;  %v3699_v32 = vld [vmem:[#allocation3 + $0x48] ss:$16 sps:$4 sm:$0xff]  }
 0x228   :  { %v4439_v27 = vmul.f32 %v3907_v21, %v1031_v43  ;;  %2581 = vmatmul.mubr.bf16.vlgmr.msra.gmra.mxu0 %v4442_v28  ;;  %v3376_v45 = vpack.c.bf16 %v1150_v42, %v1148_v41  ;;  %v1151_v50 = vrot.slane %v4431_v22, 7  ;;  %v3984_v60 = vpack.c.bf16 %v1150_v42, %v1146_v20  ;;  %v3695_v20 = vld [vmem:[#allocation3 + $0x6c] ss:$16 sps:$4 sm:$0xff]   ;;  %v3698_v21 = vld [vmem:[#allocation3 + $0x484] ss:$16 sps:$4 sm:$0xff]  }
 0x229   :  { %v3909_v25 = vpop.eup %3908  ;;  %2655 = vmatpush1.bf16.msra.mxu0 %v3669_v30  ;;  %v1175_v62 = vrot.slane %v4431_v22, 1  ;;  %v3696_v30 = vld [vmem:[#allocation3 + $0x480] ss:$16 sps:$4 sm:$0xff]   ;;  %v3711_v41 = vld [vmem:[#allocation3 + $0x8] ss:$16 sps:$4 sm:$0xff]  }
 0x22a   :  { %v3373_v37 = vpack.c.bf16 %v4439_v27, %v4431_v22  ;;  %v4453_v38 = vmul.f32 %v3909_v25, %v4411_v48  ;;  %v4475_v48 = vsel %vm73_vm1, %v1172_v39, %v1173_v40  ;;  %2656 = vmatprep.subr.bf16.mxu0 %v3677_v33  ;;  %1218 = vst [vmem:[#allocation2 + $0x18] sm:$0xff] %v3376_v45  ;;  %v1152_v51 = vrot.slane %v4439_v27, 7  ;;  %v3701_v25 = vld [vmem:[#allocation3 + $0x4c] ss:$16 sps:$4 sm:$0xff]   ;;  %v3702_v34 = vld [vmem:[#allocation3 + $0x460] ss:$16 sps:$4 sm:$0xff]  }
 0x22b   :  { %v3911_v36 = vpop.eup %3910  ;;  %v1167_v57 = vsel %vm60_vm0, 0.0, %v1151_v50  ;;  %3985 = vmatprep.mubr.msk.bf16.mxu1 %vm4496_vm4, %v3984_v60  ;;  %v1178_v6 = vrot.slane %v4439_v27, 1  ;;  %v3707_v33 = vld [vmem:[#allocation3 + $0x2c] ss:$16 sps:$4 sm:$0xff]   ;;  %v3708_v39 = vld [vmem:[#allocation3 + $0x440] ss:$16 sps:$4 sm:$0xff]  }
 0x22c   :  { %v4461_v43 = vmul.f32 %v3911_v36, %v4414_v52  ;;  %1119 = vst [vmem:[%s4678_s8 + $0x10] sm:$0xff] %v3373_v37  ;;  %1127 = vst [vmem:[#allocation2 + $0x38] sm:$0xff] %v3373_v37  ;;  %v3678_v52 = vld [vmem:[#allocation3 + $0x4e0] ss:$16 sps:$4 sm:$0xff]   ;;  %v4490_v55 = vpack.c.bf16 %v4453_v38, %v4431_v22  ;;  %v1168_v58 = vsel %vm60_vm0, 0.0, %v1152_v51  ;;  %v1153_v0 = vrot.slane %v4453_v38, 7  ;;  %3989 = vmatmul.mubr.msk.bf16.vlgmr.msra.gmra.mxu1 %vm4496_vm4, %v4506_v2 }
 0x22d   :  { %2657 = vmatpush1.bf16.msra.mxu0 %v3675_v47  ;;  %v3377_v63 = vpack.c.bf16 %v1168_v58, %v1167_v57  ;;  %v1176_v4 = vrot.slane %v4453_v38, 1  ;;  %2602 = vmatpush1.bf16.msra.mxu1 %v3678_v52  ;;  %v3710_v36 = vld [vmem:[#allocation3 + $0x444] ss:$16 sps:$4 sm:$0xff]   ;;  %v3705_v37 = vld [vmem:[#allocation3 + $0x28] ss:$16 sps:$4 sm:$0xff]  }
 0x22e   :  { %v3374_v49 = vpack.c.bf16 %v4461_v43, %v4453_v38  ;;  %v4486_v54 = vpack.c.bf16 %v4461_v43, %v4439_v27  ;;  %v1155_v1 = vrot.slane %v4461_v43, 7  ;;  %2658 = vmatprep.subr.bf16.mxu0 %v3683_v53  ;;  %v1179_v7 = vrot.slane %v4461_v43, 1  ;;  %2603 = vmatprep.subr.bf16.mxu1 %v3686_v56  ;;  %v3719_v42 = vld [vmem:[#allocation3 + $0x1ec] ss:$16 sps:$4 sm:$0xff]   ;;  %v3714_v45 = vld [vmem:[#allocation3 + $0x420] ss:$16 sps:$4 sm:$0xff]  }
 0x22f   :  { %1219 = vst [vmem:[#allocation2 + $0x30] sm:$0xff] %v3377_v63  ;;  %v1154_v10 = vsel %vm60_vm0, %v1151_v50, %v1153_v0  ;;  %v4521_v13 = vsel %vm73_vm1, %v1175_v62, %v1176_v4  ;;  %v4549_v27 = vpack.c.bf16 %v1173_v40, %v4475_v48  ;;  %v3716_v40 = vld [vmem:[#allocation3 + $0x424] ss:$16 sps:$4 sm:$0xff]   ;;  %v3717_v48 = vld [vmem:[#allocation3 + $0x1e8] ss:$16 sps:$4 sm:$0xff]  }
 0x230   :  { %1120 = vst [vmem:[%s4678_s8 + $0x18] sm:$0xff] %v3374_v49  ;;  %1128 = vst [vmem:[#allocation2 + $0x50] sm:$0xff] %v3374_v49  ;;  %2590 = vmatprep.mubr.bf16.mxu0 %v4486_v54  ;;  %v1156_v12 = vsel %vm60_vm0, %v1152_v51, %v1155_v1  ;;  %v4528_v19 = vsel %vm73_vm1, %v1178_v6, %v1179_v7  ;;  %v4535_v24 = vpack.c.bf16 %v1154_v10, %v1151_v50  ;;  %v3722_v47 = vld [vmem:[#allocation3 + $0x404] ss:$16 sps:$4 sm:$0xff]   ;;  %v3725_v49 = vld [vmem:[#allocation3 + $0x1cc] ss:$16 sps:$4 sm:$0xff]  }
 0x231   :  { %2591 = vmatmul.mubr.bf16.gmra.mxu0 %v4490_v55  ;;  %v3378_v14 = vpack.c.bf16 %v1156_v12, %v1154_v10  ;;  %2604 = vmatpush1.bf16.msra.mxu1 %v3684_v5  ;;  %v4530_v22 = vpack.c.bf16 %v1156_v12, %v1152_v51  ;;  %v3720_v50 = vld [vmem:[#allocation3 + $0x400] ss:$16 sps:$4 sm:$0xff]   ;;  %v3728_v51 = vld [vmem:[#allocation3 + $0x5e4] ss:$16 sps:$4 sm:$0xff]   ;;  %v3723_v52 = vld [vmem:[#allocation3 + $0x1c8] ss:$16 sps:$4 sm:$0xff]   ;;  %v4585_v59 = vpack.c.bf16 %v1176_v4, %v4521_v13 }
 0x232   :  { %2659 = vmatpush1.bf16.msra.mxu0 %v3681_v61  ;;  %3993 = vmatprep.mubr.msk.bf16.mxu0 %vm4496_vm4, %v3984_v60  ;;  %v3731_v53 = vld [vmem:[#allocation3 + $0x1ac] ss:$16 sps:$4 sm:$0xff]   ;;  %v3726_v56 = vld [vmem:[#allocation3 + $0x5e0] ss:$16 sps:$4 sm:$0xff]   ;;  %v3734_v57 = vld [vmem:[#allocation3 + $0x5c4] ss:$16 sps:$4 sm:$0xff]  }
 0x233   :  { %2660 = vmatprep.subr.bf16.mxu0 %v3689_v3  ;;  %1220 = vst [vmem:[#allocation2 + $0x48] sm:$0xff] %v3378_v14  ;;  %2605 = vmatprep.subr.bf16.mxu1 %v3692_v46  ;;  %v3729_v58 = vld [vmem:[#allocation3 + $0x1a8] ss:$16 sps:$4 sm:$0xff]   ;;  %v3737_v60 = vld [vmem:[#allocation3 + $0x18c] ss:$16 sps:$4 sm:$0xff]  }
 0x234   :  { %4000 = vmatprep.mubr.msk.bf16.mxu1 %vm4496_vm4, %v4530_v22  ;;  %v3732_v61 = vld [vmem:[#allocation3 + $0x5c0] ss:$16 sps:$4 sm:$0xff]   ;;  %v3740_v62 = vld [vmem:[#allocation3 + $0x5a4] ss:$16 sps:$4 sm:$0xff]   ;;  %v3735_v63 = vld [vmem:[#allocation3 + $0x188] ss:$16 sps:$4 sm:$0xff]  }
 0x235   :  { %4005 = vmatmul.mubr.msk.bf16.gmra.mxu1 %vm4496_vm4, %v4535_v24  ;;  %v3743_v0 = vld [vmem:[#allocation3 + $0x16c] ss:$16 sps:$4 sm:$0xff]   ;;  %v3738_v1 = vld [vmem:[#allocation3 + $0x5a0] ss:$16 sps:$4 sm:$0xff]   ;;  %v3746_v3 = vld [vmem:[#allocation3 + $0x584] ss:$16 sps:$4 sm:$0xff]  }
 0x236   :  { %2661 = vmatpush1.bf16.msra.mxu0 %v3687_v17  ;;  %2606 = vmatpush1.bf16.msra.mxu1 %v3690_v18  ;;  %v3741_v5 = vld [vmem:[#allocation3 + $0x168] ss:$16 sps:$4 sm:$0xff]   ;;  %v3749_v6 = vld [vmem:[#allocation3 + $0x14c] ss:$16 sps:$4 sm:$0xff]   ;;  %v3744_v10 = vld [vmem:[#allocation3 + $0x580] ss:$16 sps:$4 sm:$0xff]  }
 0x237   :  { %2662 = vmatprep.subr.bf16.mxu0 %v3695_v20  ;;  %4008 = vmatprep.mubr.msk.bf16.mxu1 %vm4542_vm5, %v4549_v27  ;;  %v3752_v12 = vld [vmem:[#allocation3 + $0x564] ss:$16 sps:$4 sm:$0xff]   ;;  %v3747_v46 = vld [vmem:[#allocation3 + $0x148] ss:$16 sps:$4 sm:$0xff]   ;;  %v3755_v14 = vld [vmem:[#allocation3 + $0x12c] ss:$16 sps:$4 sm:$0xff]  }
 0x238   :  { %2607 = vmatprep.subr.bf16.mxu1 %v3698_v21  ;;  %v3750_v17 = vld [vmem:[#allocation3 + $0x560] ss:$16 sps:$4 sm:$0xff]   ;;  %v3758_v20 = vld [vmem:[#allocation3 + $0x544] ss:$16 sps:$4 sm:$0xff]   ;;  %v3753_v18 = vld [vmem:[#allocation3 + $0x128] ss:$16 sps:$4 sm:$0xff]  }
 0x239   :  { %v3761_v21 = vld [vmem:[#allocation3 + $0x10c] ss:$16 sps:$4 sm:$0xff]   ;;  %v3798_v38 = vld [vmem:[#allocation3 + $0x268] ss:$16 sps:$4 sm:$0xff]  }
 0x23a   :  { %2663 = vmatpush1.bf16.msra.mxu0 %v3693_v23  ;;  %2608 = vmatpush1.bf16.msra.mxu1 %v3696_v30  ;;  %v3756_v23 = vld [vmem:[#allocation3 + $0x540] ss:$16 sps:$4 sm:$0xff]   ;;  %v3759_v30 = vld [vmem:[#allocation3 + $0x108] ss:$16 sps:$4 sm:$0xff]   ;;  %v3788_v15 = vld [vmem:[#allocation3 + $0x2ac] ss:$16 sps:$4 sm:$0xff]  }
 0x23b   :  { %2664 = vmatprep.subr.bf16.mxu0 %v3701_v25  ;;  %2609 = vmatprep.subr.bf16.mxu1 %v3704_v31  ;;  %v3764_v25 = vld [vmem:[#allocation3 + $0x524] ss:$16 sps:$4 sm:$0xff]   ;;  %v3767_v31 = vld [vmem:[#allocation3 + $0x4ec] ss:$16 sps:$4 sm:$0xff]   ;;  %v3801_v13 = vld [vmem:[#allocation3 + $0x428] ss:$16 sps:$4 sm:$0xff]  }
 0x23c   :  { %v3791_v43 = vld [vmem:[#allocation3 + $0x46c] ss:$16 sps:$4 sm:$0xff]  }
 0x23d   :  { %v3806_v4 = vld [vmem:[#allocation3 + $0x24c] ss:$16 sps:$4 sm:$0xff]  }
 0x23e   :  { %2665 = vmatpush1.bf16.msra.mxu0 %v3699_v32  ;;  %2610 = vmatpush1.bf16.msra.mxu1 %v3702_v34  ;;  %v3762_v32 = vld [vmem:[#allocation3 + $0x520] ss:$16 sps:$4 sm:$0xff]   ;;  %v3765_v34 = vld [vmem:[#allocation3 + $0x4e8] ss:$16 sps:$4 sm:$0xff]  }
 0x23f   :  { %2666 = vmatprep.subr.bf16.mxu0 %v3707_v33  ;;  %2611 = vmatprep.subr.bf16.mxu1 %v3710_v36  ;;  %v3770_v33 = vld [vmem:[#allocation3 + $0x504] ss:$16 sps:$4 sm:$0xff]   ;;  %v3773_v36 = vld [vmem:[#allocation3 + $0x4cc] ss:$16 sps:$4 sm:$0xff]  }
 0x242   :  { %2667 = vmatpush1.bf16.msra.mxu0 %v3705_v37  ;;  %2612 = vmatpush1.bf16.msra.mxu1 %v3708_v39  ;;  %v3768_v37 = vld [vmem:[#allocation3 + $0x500] ss:$16 sps:$4 sm:$0xff]   ;;  %v3771_v39 = vld [vmem:[#allocation3 + $0x4c8] ss:$16 sps:$4 sm:$0xff]  }
 0x243   :  { %2668 = vmatprep.subr.bf16.mxu0 %v3713_v16  ;;  %2613 = vmatprep.subr.bf16.mxu1 %v3716_v40  ;;  %v3776_v16 = vld [vmem:[#allocation3 + $0x2ec] ss:$16 sps:$4 sm:$0xff]  }
 0x244   :  { %v3779_v40 = vld [vmem:[#allocation3 + $0x4ac] ss:$16 sps:$4 sm:$0xff]  }
 0x246   :  { %2669 = vmatpush1.bf16.msra.mxu0 %v3711_v41  ;;  %2614 = vmatpush1.bf16.msra.mxu1 %v3714_v45  ;;  %v3774_v41 = vld [vmem:[#allocation3 + $0x2e8] ss:$16 sps:$4 sm:$0xff]  }
 0x247   :  { %2670 = vmatprep.subr.bf16.mxu0 %v3719_v42  ;;  %2615 = vmatprep.subr.bf16.mxu1 %v3722_v47  ;;  %v3782_v42 = vld [vmem:[#allocation3 + $0x2cc] ss:$16 sps:$4 sm:$0xff]   ;;  %v3777_v45 = vld [vmem:[#allocation3 + $0x4a8] ss:$16 sps:$4 sm:$0xff]   ;;  %v4571_v47 = vpack.c.bf16 %v1179_v7, %v4528_v19 }
 0x248   :  { %v3794_v7 = vld [vmem:[#allocation3 + $0x28c] ss:$16 sps:$4 sm:$0xff]   ;;  %v3789_v19 = vld [vmem:[#allocation3 + $0x468] ss:$16 sps:$4 sm:$0xff]  }
 0x24a   :  { %2671 = vmatpush2.bf16.msra.mxu0 %v3717_v48  ;;  %2616 = vmatpush1.bf16.msra.mxu1 %v3720_v50  ;;  %v3780_v48 = vld [vmem:[#allocation3 + $0x2c8] ss:$16 sps:$4 sm:$0xff]  }
 0x24b   :  { %2672 = vmatprep.subr.bf16.mxu0 %v3725_v49  ;;  %2617 = vmatprep.subr.bf16.mxu1 %v3728_v51  ;;  %v3800_v49 = vld [vmem:[#allocation3 + $0x26c] ss:$16 sps:$4 sm:$0xff]   ;;  %v3795_v50 = vld [vmem:[#allocation3 + $0x448] ss:$16 sps:$4 sm:$0xff]  }
 0x24c   :  { %v3803_v51 = vld [vmem:[#allocation3 + $0x42c] ss:$16 sps:$4 sm:$0xff]  }
 0x24e   :  { %2673 = vmatpush2.bf16.msra.mxu0 %v3723_v52  ;;  %2618 = vmatpush2.bf16.msra.mxu1 %v3726_v56  ;;  %v3809_v52 = vld [vmem:[#allocation3 + $0x40c] ss:$16 sps:$4 sm:$0xff]  }
 0x24f   :  { %2674 = vmatprep.subr.bf16.mxu0 %v3731_v53  ;;  %2619 = vmatprep.subr.bf16.mxu1 %v3734_v57  ;;  %v3804_v53 = vld [vmem:[#allocation3 + $0x248] ss:$16 sps:$4 sm:$0xff]   ;;  %v3812_v56 = vld [vmem:[#allocation3 + $0x22c] ss:$16 sps:$4 sm:$0xff]  }
 0x250   :  { %v3815_v57 = vld [vmem:[#allocation3 + $0x5ec] ss:$16 sps:$4 sm:$0xff]  }
 0x252   :  { %2675 = vmatpush2.bf16.msra.mxu0 %v3729_v58  ;;  %2620 = vmatpush2.bf16.msra.mxu1 %v3732_v61  ;;  %v3810_v58 = vld [vmem:[#allocation3 + $0x228] ss:$16 sps:$4 sm:$0xff]  }
 0x253   :  { %2676 = vmatprep.subr.bf16.mxu0 %v3737_v60  ;;  %2621 = vmatprep.subr.bf16.mxu1 %v3740_v62  ;;  %v3818_v60 = vld [vmem:[#allocation3 + $0x20c] ss:$16 sps:$4 sm:$0xff]   ;;  %v3813_v61 = vld [vmem:[#allocation3 + $0x5e8] ss:$16 sps:$4 sm:$0xff]  }
 0x254   :  { %v3821_v62 = vld [vmem:[#allocation3 + $0x5cc] ss:$16 sps:$4 sm:$0xff]  }
 0x256   :  { %2677 = vmatpush2.bf16.msra.mxu0 %v3735_v63  ;;  %2622 = vmatpush2.bf16.msra.mxu1 %v3738_v1  ;;  %v3816_v63 = vld [vmem:[#allocation3 + $0x208] ss:$16 sps:$4 sm:$0xff]  }
 0x257   :  { %2678 = vmatprep.subr.bf16.mxu0 %v3743_v0  ;;  %2623 = vmatprep.subr.bf16.mxu1 %v3746_v3  ;;  %v3824_v0 = vld [vmem:[#allocation3 + $0x3ec] ss:$16 sps:$4 sm:$0xff]   ;;  %v3819_v1 = vld [vmem:[#allocation3 + $0x5c8] ss:$16 sps:$4 sm:$0xff]  }
 0x258   :  { %v3827_v3 = vld [vmem:[#allocation3 + $0x5ac] ss:$16 sps:$4 sm:$0xff]  }
 0x25a   :  { %2679 = vmatpush2.bf16.msra.mxu0 %v3741_v5  ;;  %2624 = vmatpush2.bf16.msra.mxu1 %v3744_v10  ;;  %v3822_v5 = vld [vmem:[#allocation3 + $0x3e8] ss:$16 sps:$4 sm:$0xff]  }
 0x25b   :  { %2680 = vmatprep.subr.bf16.mxu0 %v3749_v6  ;;  %2625 = vmatprep.subr.bf16.mxu1 %v3752_v12  ;;  %v3830_v6 = vld [vmem:[#allocation3 + $0x3cc] ss:$16 sps:$4 sm:$0xff]   ;;  %v3825_v10 = vld [vmem:[#allocation3 + $0x5a8] ss:$16 sps:$4 sm:$0xff]  }
 0x25c   :  { %v3833_v12 = vld [vmem:[#allocation3 + $0x58c] ss:$16 sps:$4 sm:$0xff]  }
 0x25e   :  { %2681 = vmatpush2.bf16.msra.mxu0 %v3747_v46  ;;  %2626 = vmatpush2.bf16.msra.mxu1 %v3750_v17  ;;  %v3828_v46 = vld [vmem:[#allocation3 + $0x3c8] ss:$16 sps:$4 sm:$0xff]  }
 0x25f   :  { %2682 = vmatprep.subr.bf16.mxu0 %v3755_v14  ;;  %2627 = vmatprep.subr.bf16.mxu1 %v3758_v20  ;;  %v3836_v14 = vld [vmem:[#allocation3 + $0x3ac] ss:$16 sps:$4 sm:$0xff]   ;;  %v3831_v17 = vld [vmem:[#allocation3 + $0x588] ss:$16 sps:$4 sm:$0xff]  }
 0x260   :  { %v3839_v20 = vld [vmem:[#allocation3 + $0x56c] ss:$16 sps:$4 sm:$0xff]  }
 0x262   :  { %2683 = vmatpush2.bf16.msra.mxu0 %v3753_v18  ;;  %2628 = vmatpush2.bf16.msra.mxu1 %v3756_v23  ;;  %v3834_v18 = vld [vmem:[#allocation3 + $0x3a8] ss:$16 sps:$4 sm:$0xff]  }
 0x263   :  { %2684 = vmatprep.subr.bf16.mxu0 %v3761_v21  ;;  %2629 = vmatprep.subr.bf16.mxu1 %v3764_v25  ;;  %v3842_v21 = vld [vmem:[#allocation3 + $0x38c] ss:$16 sps:$4 sm:$0xff]   ;;  %v3837_v23 = vld [vmem:[#allocation3 + $0x568] ss:$16 sps:$4 sm:$0xff]  }
 0x264   :  { %v3845_v25 = vld [vmem:[#allocation3 + $0x54c] ss:$16 sps:$4 sm:$0xff]  }
 0x266   :  { %2685 = vmatpush2.bf16.msra.mxu0 %v3759_v30  ;;  %2630 = vmatpush2.bf16.msra.mxu1 %v3762_v32  ;;  %v3840_v30 = vld [vmem:[#allocation3 + $0x388] ss:$16 sps:$4 sm:$0xff]  }
 0x267   :  { %2760 = vmatprep.subr.bf16.mxu0 %v3767_v31  ;;  %2631 = vmatprep.subr.bf16.mxu1 %v3770_v33  ;;  %v3848_v31 = vld [vmem:[#allocation3 + $0x36c] ss:$16 sps:$4 sm:$0xff]   ;;  %v3843_v32 = vld [vmem:[#allocation3 + $0x548] ss:$16 sps:$4 sm:$0xff]  }
 0x268   :  { %v3851_v33 = vld [vmem:[#allocation3 + $0x52c] ss:$16 sps:$4 sm:$0xff]  }
 0x269   :  { %4012 = vmatmul.mubr.msk.bf16.vlgmr.msra.gmra.mxu0 %vm4496_vm4, %v4506_v2  ;;  %v4563_v2 = vpack.c.bf16 %v1170_v35, %v4467_v44  ;;  %v3783_v35 = vld [vmem:[#allocation3 + $0x488] ss:$16 sps:$4 sm:$0xff]  }
 0x26a   :  { %4016 = vmatprep.mubr.msk.bf16.mxu0 %vm4496_vm4, %v4530_v22  ;;  %2761 = vmatpush1.bf16.msra.mxu0 %v3765_v34  ;;  %v3785_v22 = vld [vmem:[#allocation3 + $0x48c] ss:$16 sps:$4 sm:$0xff]   ;;  %v3786_v44 = vld [vmem:[#allocation3 + $0x2a8] ss:$16 sps:$4 sm:$0xff]  }
 0x26b   :  { %2762 = vmatprep.subr.bf16.mxu0 %v3773_v36  ;;  %2632 = vmatpush2.bf16.msra.mxu1 %v3768_v37  ;;  %v3846_v34 = vld [vmem:[#allocation3 + $0x368] ss:$16 sps:$4 sm:$0xff]   ;;  %v3854_v36 = vld [vmem:[#allocation3 + $0x34c] ss:$16 sps:$4 sm:$0xff]  }
 0x26c   :  { %2707 = vmatprep.subr.bf16.mxu1 %v3776_v16  ;;  %v3849_v37 = vld [vmem:[#allocation3 + $0x528] ss:$16 sps:$4 sm:$0xff]   ;;  %v3857_v16 = vld [vmem:[#allocation3 + $0x50c] ss:$16 sps:$4 sm:$0xff]  }
 0x26e   :  { %2763 = vmatpush1.bf16.msra.mxu0 %v3771_v39  ;;  %4021 = vmatmul.mubr.msk.bf16.vlgmr.msra.gmra.mxu1 %vm4542_vm5, %v4563_v2  ;;  %v3852_v39 = vld [vmem:[#allocation3 + $0x348] ss:$16 sps:$4 sm:$0xff]  }
 0x26f   :  { %2764 = vmatprep.subr.bf16.mxu0 %v3779_v40  ;;  %4024 = vmatprep.mubr.msk.bf16.mxu1 %vm4542_vm5, %v4571_v47  ;;  %v3860_v40 = vld [vmem:[#allocation3 + $0x32c] ss:$16 sps:$4 sm:$0xff]  }
 0x270   :  { %2708 = vmatpush1.bf16.msra.mxu1 %v3774_v41  ;;  %v3855_v41 = vld [vmem:[#allocation3 + $0x508] ss:$16 sps:$4 sm:$0xff]  }
 0x271   :  { %4028 = vmatmul.mubr.msk.bf16.gmra.mxu0 %vm4496_vm4, %v4535_v24  ;;  %2709 = vmatprep.subr.bf16.mxu1 %v3782_v42  ;;  %v3797_v24 = vld [vmem:[#allocation3 + $0x44c] ss:$16 sps:$4 sm:$0xff]   ;;  %v3858_v42 = vld [vmem:[#allocation3 + $0x328] ss:$16 sps:$4 sm:$0xff]  }
 0x272   :  { %2765 = vmatpush1.bf16.msra.mxu0 %v3777_v45  ;;  %4031 = vmatprep.mubr.msk.bf16.mxu0 %vm4542_vm5, %v4549_v27  ;;  %v3792_v27 = vld [vmem:[#allocation3 + $0x288] ss:$16 sps:$4 sm:$0xff]   ;;  %v3863_v45 = vld [vmem:[#allocation3 + $0x30c] ss:$16 sps:$4 sm:$0xff]  }
 0x273   :  { %2766 = vmatprep.subr.bf16.mxu0 %v3785_v22  ;;  %v3861_v22 = vld [vmem:[#allocation3 + $0x308] ss:$16 sps:$4 sm:$0xff]  }
 0x274   :  { %2710 = vmatpush1.bf16.msra.mxu1 %v3780_v48 }
 0x275   :  { %2711 = vmatprep.subr.bf16.mxu1 %v3788_v15 }
 0x276   :  { %2767 = vmatpush1.bf16.msra.mxu0 %v3783_v35  ;;  %4034 = vmatmul.mubr.msk.bf16.gmra.mxu1 %vm4542_vm5, %v4585_v59 }
 0x277   :  { %2768 = vmatprep.subr.bf16.mxu0 %v3791_v43  ;;  %2739 = vmatprep.mubr.bf16.mxu1 %v4445_v29  ;;  %v3807_v29 = vld [vmem:[#allocation3 + $0x408] ss:$16 sps:$4 sm:$0xff]  }
 0x278   :  { %2712 = vmatpush1.bf16.msra.mxu1 %v3786_v44 }
 0x279   :  { %2713 = vmatprep.subr.bf16.mxu1 %v3794_v7 }
 0x27a   :  { %2769 = vmatpush1.bf16.msra.mxu0 %v3789_v19 }
 0x27b   :  { %2770 = vmatprep.subr.bf16.mxu0 %v3797_v24 }
 0x27c   :  { %2714 = vmatpush1.bf16.msra.mxu1 %v3792_v27 }
 0x27d   :  { %2715 = vmatprep.subr.bf16.mxu1 %v3800_v49 }
 0x27e   :  { %2771 = vmatpush1.bf16.msra.mxu0 %v3795_v50 }
 0x27f   :  { %2772 = vmatprep.subr.bf16.mxu0 %v3803_v51 }
 0x280   :  { %2716 = vmatpush1.bf16.msra.mxu1 %v3798_v38 }
 0x281   :  { %2717 = vmatprep.subr.bf16.mxu1 %v3806_v4 }
 0x282   :  { %2773 = vmatpush1.bf16.msra.mxu0 %v3801_v13 }
 0x283   :  { %2774 = vmatprep.subr.bf16.mxu0 %v3809_v52 }
 0x284   :  { %2718 = vmatpush1.bf16.msra.mxu1 %v3804_v53 }
 0x285   :  { %2719 = vmatprep.subr.bf16.mxu1 %v3812_v56 }
 0x286   :  { %2775 = vmatpush1.bf16.msra.mxu0 %v3807_v29 }
 0x287   :  { %2776 = vmatprep.subr.bf16.mxu0 %v3815_v57 }
 0x288   :  { %2720 = vmatpush1.bf16.msra.mxu1 %v3810_v58 }
 0x289   :  { %2721 = vmatprep.subr.bf16.mxu1 %v3818_v60 }
 0x28a   :  { %2777 = vmatpush2.bf16.msra.mxu0 %v3813_v61 }
 0x28b   :  { %2778 = vmatprep.subr.bf16.mxu0 %v3821_v62 }
 0x28c   :  { %2722 = vmatpush1.bf16.msra.mxu1 %v3816_v63 }
 0x28d   :  { %2723 = vmatprep.subr.bf16.mxu1 %v3824_v0 }
 0x28e   :  { %2779 = vmatpush2.bf16.msra.mxu0 %v3819_v1 }
 0x28f   :  { %2780 = vmatprep.subr.bf16.mxu0 %v3827_v3 }
 0x290   :  { %2724 = vmatpush2.bf16.msra.mxu1 %v3822_v5 }
 0x291   :  { %2725 = vmatprep.subr.bf16.mxu1 %v3830_v6 }
 0x292   :  { %2781 = vmatpush2.bf16.msra.mxu0 %v3825_v10 }
 0x293   :  { %2782 = vmatprep.subr.bf16.mxu0 %v3833_v12 }
 0x294   :  { %2726 = vmatpush2.bf16.msra.mxu1 %v3828_v46 }
 0x295   :  { %2727 = vmatprep.subr.bf16.mxu1 %v3836_v14 }
 0x296   :  { %2783 = vmatpush2.bf16.msra.mxu0 %v3831_v17 }
 0x297   :  { %2784 = vmatprep.subr.bf16.mxu0 %v3839_v20 }
 0x298   :  { %2728 = vmatpush2.bf16.msra.mxu1 %v3834_v18 }
 0x299   :  { %2729 = vmatprep.subr.bf16.mxu1 %v3842_v21 }
 0x29a   :  { %2785 = vmatpush2.bf16.msra.mxu0 %v3837_v23 }
 0x29b   :  { %2786 = vmatprep.subr.bf16.mxu0 %v3845_v25 }
 0x29c   :  { %2730 = vmatpush2.bf16.msra.mxu1 %v3840_v30 }
 0x29d   :  { %2731 = vmatprep.subr.bf16.mxu1 %v3848_v31 }
 0x29e   :  { %2787 = vmatpush2.bf16.msra.mxu0 %v3843_v32 }
 0x29f   :  { %2788 = vmatprep.subr.bf16.mxu0 %v3851_v33 }
 0x2a0   :  { %2732 = vmatpush2.bf16.msra.mxu1 %v3846_v34 }
 0x2a1   :  { %2733 = vmatprep.subr.bf16.mxu1 %v3854_v36 }
 0x2a2   :  { %2789 = vmatpush2.bf16.msra.mxu0 %v3849_v37 }
 0x2a3   :  { %2790 = vmatprep.subr.bf16.mxu0 %v3857_v16 }
 0x2a4   :  { %2734 = vmatpush2.bf16.msra.mxu1 %v3852_v39 }
 0x2a5   :  { %2735 = vmatprep.subr.bf16.mxu1 %v3860_v40 }
 0x2a6   :  { %2791 = vmatpush2.bf16.msra.mxu0 %v3855_v41 }
 0x2a8   :  { %2736 = vmatpush2.bf16.msra.mxu1 %v3858_v42 }
 0x2a9   :  { %4037 = vmatmul.mubr.msk.bf16.vlgmr.msra.gmra.mxu0 %vm4542_vm5, %v4563_v2  ;;  %2737 = vmatprep.subr.bf16.mxu1 %v3863_v45 }
 0x2aa   :  { %4040 = vmatprep.mubr.msk.bf16.mxu0 %vm4542_vm5, %v4571_v47  ;;  %v4606_v47 = vld [vmem:[%s4676_s6] sm:$0xf] }
 0x2ac   :  { %2738 = vmatpush2.bf16.msra.mxu1 %v3861_v22 }
 0x2af   :  { %2740 = vmatmul.mubr.bf16.vlgmr.msra.gmra.mxu1 %v4442_v28 }
 0x2b0   :  { %2749 = vmatprep.mubr.bf16.mxu1 %v4486_v54  ;;  %v1458_v54 = vrot.slane %v4606_v47, %v651_v9 }
 0x2b1   :  { %4043 = vmatmul.mubr.msk.bf16.gmra.mxu0 %vm4542_vm5, %v4585_v59 }
 0x2b7   :  { %2750 = vmatmul.mubr.bf16.gmra.mxu1 %v4490_v55  ;;  %v1462_v55 = vrot.slane %v4606_v47, %v655_v11 }
 0x2e8   :  { %v2582_v43 = vpop.f32.mrf.mxu0 }
 0x2ea   :  { %v2584_v7 = vpop.f32.mrf.mxu0 }
 0x2ec   :  { %v2529_v48 = vpop.f32.mrf.mxu1  ;;  %v2586_v26 = vpop.f32.mrf.mxu0 }
 0x2ed   :  { %v2530_v59 = vadd.f32 %v2529_v48, %v1458_v54 }
 0x2ee   :  { %v2531_v15 = vpop.f32.mrf.mxu1  ;;  %v2588_v24 = vpop.f32.mrf.mxu0 }
 0x2ef   :  { %v2532_v27 = vadd.f32 %v2531_v15, %v1462_v55  ;;  %v2583_v51 = vadd.f32 %v2582_v43, %v2530_v59 }
 0x2f0   :  { %v2533_v35 = vpop.f32.mrf.mxu1 }
 0x2f1   :  { %v2534_v50 = vadd.f32 %v2533_v35, %v1458_v54  ;;  %v2592_v38 = vpop.f32.mrf.mxu0  ;;  %v2585_v53 = vadd.f32 %v2584_v7, %v2532_v27 }
 0x2f2   :  { %v2535_v2 = vpop.f32.mrf.mxu1 }
 0x2f3   :  { %v2536_v13 = vadd.f32 %v2535_v2, %v1462_v55  ;;  %v2587_v11 = vadd.f32 %v2586_v26, %v2534_v50  ;;  %v2594_v58 = vpop.f32.mrf.mxu0 }
 0x2f5   :  { %v2539_v44 = vpop.f32.mrf.mxu1  ;;  %v2589_v0 = vadd.f32 %v2588_v24, %v2536_v13  ;;  %v2596_v12 = vpop.f32.mrf.mxu0 }
 0x2f6   :  { %v2540_v56 = vadd.f32 %v2539_v44, %v1458_v54 }
 0x2f7   :  { %v2541_v28 = vpop.f32.mrf.mxu1  ;;  %v2598_v31 = vpop.f32.mrf.mxu0 }
 0x2f8   :  { %v2542_v60 = vadd.f32 %v2541_v28, %v1462_v55  ;;  %v2593_v3 = vadd.f32 %v2592_v38, %v2540_v56 }
 0x2f9   :  { %v2543_v19 = vpop.f32.mrf.mxu1 }
 0x2fa   :  { %v2544_v5 = vadd.f32 %v2543_v19, %v1458_v54  ;;  %v2595_v14 = vadd.f32 %v2594_v58, %v2542_v60 }
 0x2fb   :  { %v2545_v49 = vpop.f32.mrf.mxu1 }
 0x2fc   :  { %v2546_v17 = vadd.f32 %v2545_v49, %v1462_v55  ;;  %v2597_v30 = vadd.f32 %v2596_v12, %v2544_v5  ;;  %v1465_v12 = vsub.s32 2, %v4391_v8 }
 0x2fe   :  { %v2599_v36 = vadd.f32 %v2598_v31, %v2546_v17 }
 0x329   :  { %v2688_v28 = vpop.f32.mrf.mxu0 }
 0x32b   :  { %v2690_v59 = vpop.f32.mrf.mxu0 }
 0x32d   :  { %v2692_v50 = vpop.f32.mrf.mxu0 }
 0x32e   :  { %v2635_v4 = vpop.f32.mrf.mxu1 }
 0x32f   :  { %v4614_v52 = vadd.f32 %v2635_v4, %v2583_v51  ;;  %v2694_v56 = vpop.f32.mrf.mxu0 }
 0x330   :  { %v2637_v9 = vpop.f32.mrf.mxu1 }
 0x331   :  { %v3327_v29 = vmul.f32 -1.442695, %v4614_v52  ;;  %v4617_v57 = vadd.f32 %v2637_v9, %v2585_v53 }
 0x332   :  { %v2639_v61 = vpop.f32.mrf.mxu1 }
 0x333   :  { %3912 = vpow2.f32 %v3327_v29  ;;  %v3328_v62 = vmul.f32 -1.442695, %v4617_v57  ;;  %v4620_v63 = vadd.f32 %v2639_v61, %v2587_v11  ;;  %v2698_v61 = vpop.f32.mrf.mxu0 }
 0x334   :  { %v2641_v1 = vpop.f32.mrf.mxu1 }
 0x335   :  { %3914 = vpow2.f32 %v3328_v62  ;;  %v3331_v6 = vmul.f32 -1.442695, %v4620_v63  ;;  %v4623_v10 = vadd.f32 %v2641_v1, %v2589_v0 }
 0x336   :  { %v2645_v46 = vpop.f32.mrf.mxu1 }
 0x337   :  { %3916 = vpow2.f32 %v3331_v6  ;;  %v3332_v20 = vmul.f32 -1.442695, %v4623_v10  ;;  %v2646_v18 = vadd.f32 %v2645_v46, %v2593_v3  ;;  %v2700_v3 = vpop.f32.mrf.mxu0 }
 0x338   :  { %v2647_v21 = vpop.f32.mrf.mxu1 }
 0x339   :  { %3918 = vpow2.f32 %v3332_v20  ;;  %v3335_v23 = vmul.f32 -1.442695, %v2646_v18  ;;  %v2648_v25 = vadd.f32 %v2647_v21, %v2595_v14  ;;  %v1469_v14 = vsub.s32 3, %v4391_v8 }
 0x33a   :  { %v2649_v32 = vpop.f32.mrf.mxu1  ;;  %v1466_v20 = vrot.slane %v4606_v47, %v1465_v12 }
 0x33b   :  { %3920 = vpow2.f32 %v3335_v23  ;;  %v3336_v33 = vmul.f32 -1.442695, %v2648_v25  ;;  %v2650_v34 = vadd.f32 %v2649_v32, %v2597_v30  ;;  %v1470_v21 = vrot.slane %v4606_v47, %v1469_v14 }
 0x33c   :  { %v2651_v37 = vpop.f32.mrf.mxu1  ;;  %v2699_v47 = vadd.f32 %v2698_v61, %v1466_v20 }
 0x33d   :  { %3922 = vpow2.f32 %v3336_v33  ;;  %v3339_v16 = vmul.f32 -1.442695, %v2650_v34  ;;  %v2652_v39 = vadd.f32 %v2651_v37, %v2599_v36  ;;  %v2691_v32 = vadd.f32 %v2690_v59, %v1470_v21 }
 0x33e   :  { %v2693_v36 = vadd.f32 %v2692_v50, %v1466_v20  ;;  %v2695_v8 = vadd.f32 %v2694_v56, %v1470_v21 }
 0x33f   :  { %3924 = vpow2.f32 %v3339_v16  ;;  %v3340_v40 = vmul.f32 -1.442695, %v2652_v39 }
 0x340   :  { %v3913_v41 = vpop.eup %3912 }
 0x341   :  { %v2861_v42 = vadd.f32 1.0, %v3913_v41  ;;  %3926 = vpow2.f32 %v3340_v40 }
 0x342   :  { %v3915_v45 = vpop.eup %3914 }
 0x343   :  { %3928 = vrcp.f32 %v2861_v42  ;;  %v2862_v22 = vadd.f32 1.0, %v3915_v45 }
 0x344   :  { %v3917_v48 = vpop.eup %3916 }
 0x345   :  { %3930 = vrcp.f32 %v2862_v22  ;;  %v2865_v15 = vadd.f32 1.0, %v3917_v48 }
 0x346   :  { %v3919_v35 = vpop.eup %3918 }
 0x347   :  { %3932 = vrcp.f32 %v2865_v15  ;;  %v2866_v2 = vadd.f32 1.0, %v3919_v35 }
 0x348   :  { %v3921_v43 = vpop.eup %3920 }
 0x349   :  { %3934 = vrcp.f32 %v2866_v2  ;;  %v2869_v44 = vadd.f32 1.0, %v3921_v43  ;;  %v2701_v2 = vadd.f32 %v2700_v3, %v1470_v21 }
 0x34a   :  { %v3923_v7 = vpop.eup %3922 }
 0x34b   :  { %3936 = vrcp.f32 %v2869_v44  ;;  %v2870_v54 = vadd.f32 1.0, %v3923_v7 }
 0x34c   :  { %v3925_v26 = vpop.eup %3924 }
 0x34d   :  { %3938 = vrcp.f32 %v2870_v54  ;;  %v2873_v55 = vadd.f32 1.0, %v3925_v26 }
 0x34e   :  { %v3927_v19 = vpop.eup %3926 }
 0x34f   :  { %3940 = vrcp.f32 %v2873_v55  ;;  %v2874_v24 = vadd.f32 1.0, %v3927_v19 }
 0x350   :  { %v3929_v27 = vpop.eup %3928 }
 0x351   :  { %3942 = vrcp.f32 %v2874_v24  ;;  %v2909_v51 = vmul.f32 %v3929_v27, %v4614_v52 }
 0x352   :  { %v3931_v49 = vpop.eup %3930 }
 0x353   :  { %v2910_v38 = vmul.f32 %v3931_v49, %v4617_v57 }
 0x354   :  { %v3933_v4 = vpop.eup %3932 }
 0x355   :  { %v3383_v13 = vpack.c.bf16 %v2910_v38, %v2909_v51  ;;  %v2913_v9 = vmul.f32 %v3933_v4, %v4620_v63 }
 0x356   :  { %v3935_v53 = vpop.eup %3934 }
 0x357   :  { %2973 = vst [vmem:[%s4679_s9] sm:$0xff] %v3383_v13  ;;  %v2914_v29 = vmul.f32 %v3935_v53, %v4623_v10  ;;  %v2702_v10 = vpop.f32.mrf.mxu0 }
 0x358   :  { %v3937_v11 = vpop.eup %3936  ;;  %v2703_v26 = vadd.f32 %v2702_v10, %v1466_v20 }
 0x359   :  { %v3385_v58 = vpack.c.bf16 %v2914_v29, %v2913_v9  ;;  %v2917_v52 = vmul.f32 %v3937_v11, %v2646_v18  ;;  %v2704_v46 = vpop.f32.mrf.mxu0 }
 0x35a   :  { %v3939_v60 = vpop.eup %3938  ;;  %v2705_v27 = vadd.f32 %v2704_v46, %v1470_v21 }
 0x35b   :  { %2975 = vst [vmem:[%s4679_s9 + $0x10] sm:$0xff] %v3385_v58  ;;  %v2918_v57 = vmul.f32 %v3939_v60, %v2648_v25  ;;  %v2689_v25 = vadd.f32 %v2688_v28, %v1466_v20 }
 0x35c   :  { %v3941_v62 = vpop.eup %3940 }
 0x35d   :  { %v3387_v0 = vpack.c.bf16 %v2918_v57, %v2917_v52  ;;  %v2921_v63 = vmul.f32 %v3941_v62, %v2650_v34 }
 0x35e   :  { %v3943_v1 = vpop.eup %3942 }
 0x35f   :  { %2977 = vst [vmem:[%s4679_s9 + $0x20] sm:$0xff] %v3387_v0  ;;  %v2922_v5 = vmul.f32 %v3943_v1, %v2652_v39 }
 0x361   :  { %v3389_v6 = vpack.c.bf16 %v2922_v5, %v2921_v63 }
 0x363   :  { %2979 = vst [vmem:[%s4679_s9 + $0x30] sm:$0xff] %v3389_v6 }
 0x369   :  { %v2794_v17 = vpop.f32.mrf.mxu0 }
 0x36b   :  { %v2796_v18 = vpop.f32.mrf.mxu0 }
 0x36d   :  { %v2798_v23 = vpop.f32.mrf.mxu0 }
 0x36f   :  { %v2800_v30 = vpop.f32.mrf.mxu0  ;;  %v2741_v31 = vpop.f32.mrf.mxu1 }
 0x370   :  { %v2742_v33 = vadd.f32 %v2741_v31, %v2689_v25 }
 0x371   :  { %v2743_v34 = vpop.f32.mrf.mxu1  ;;  %v2804_v39 = vpop.f32.mrf.mxu0 }
 0x372   :  { %v4646_v37 = vadd.f32 %v2794_v17, %v2742_v33  ;;  %v2744_v16 = vadd.f32 %v2743_v34, %v2691_v32 }
 0x373   :  { %v2745_v40 = vpop.f32.mrf.mxu1  ;;  %v2806_v43 = vpop.f32.mrf.mxu0 }
 0x374   :  { %v3329_v41 = vmul.f32 -1.442695, %v4646_v37  ;;  %v4649_v42 = vadd.f32 %v2796_v18, %v2744_v16  ;;  %v2746_v45 = vadd.f32 %v2745_v40, %v2693_v36 }
 0x375   :  { %v2747_v22 = vpop.f32.mrf.mxu1  ;;  %v2808_v49 = vpop.f32.mrf.mxu0 }
 0x376   :  { %3944 = vpow2.f32 %v3329_v41  ;;  %v3330_v48 = vmul.f32 -1.442695, %v4649_v42  ;;  %v4652_v15 = vadd.f32 %v2798_v23, %v2746_v45  ;;  %v2748_v35 = vadd.f32 %v2747_v22, %v2695_v8 }
 0x377   :  { %v2751_v44 = vpop.f32.mrf.mxu1  ;;  %v2810_v29 = vpop.f32.mrf.mxu0 }
 0x378   :  { %3946 = vpow2.f32 %v3330_v48  ;;  %v3333_v7 = vmul.f32 -1.442695, %v4652_v15  ;;  %v2801_v28 = vadd.f32 %v2800_v30, %v2748_v35  ;;  %v2752_v54 = vadd.f32 %v2751_v44, %v2699_v47 }
 0x379   :  { %v2753_v55 = vpop.f32.mrf.mxu1 }
 0x37a   :  { %3948 = vpow2.f32 %v3333_v7  ;;  %v3334_v19 = vmul.f32 -1.442695, %v2801_v28  ;;  %v2805_v59 = vadd.f32 %v2804_v39, %v2752_v54  ;;  %v2754_v24 = vadd.f32 %v2753_v55, %v2701_v2 }
 0x37b   :  { %v2755_v50 = vpop.f32.mrf.mxu1 }
 0x37c   :  { %3950 = vpow2.f32 %v3334_v19  ;;  %v3337_v51 = vmul.f32 -1.442695, %v2805_v59  ;;  %v2807_v38 = vadd.f32 %v2806_v43, %v2754_v24  ;;  %v2756_v4 = vadd.f32 %v2755_v50, %v2703_v26 }
 0x37d   :  { %v2757_v13 = vpop.f32.mrf.mxu1 }
 0x37e   :  { %3952 = vpow2.f32 %v3337_v51  ;;  %v3338_v53 = vmul.f32 -1.442695, %v2807_v38  ;;  %v2809_v56 = vadd.f32 %v2808_v49, %v2756_v4  ;;  %v2758_v9 = vadd.f32 %v2757_v13, %v2705_v27 }
 0x380   :  { %3954 = vpow2.f32 %v3338_v53  ;;  %v3341_v11 = vmul.f32 -1.442695, %v2809_v56  ;;  %v2811_v58 = vadd.f32 %v2810_v29, %v2758_v9 }
 0x382   :  { %3956 = vpow2.f32 %v3341_v11  ;;  %v3342_v60 = vmul.f32 -1.442695, %v2811_v58 }
 0x383   :  { %v3945_v61 = vpop.eup %3944 }
 0x384   :  { %v2863_v52 = vadd.f32 1.0, %v3945_v61  ;;  %3958 = vpow2.f32 %v3342_v60 }
 0x385   :  { %v3947_v57 = vpop.eup %3946 }
 0x386   :  { %3960 = vrcp.f32 %v2863_v52  ;;  %v2864_v62 = vadd.f32 1.0, %v3947_v57 }
 0x387   :  { %v3949_v0 = vpop.eup %3948 }
 0x388   :  { %3962 = vrcp.f32 %v2864_v62  ;;  %v2867_v1 = vadd.f32 1.0, %v3949_v0 }
 0x389   :  { %v3951_v3 = vpop.eup %3950 }
 0x38a   :  { %3964 = vrcp.f32 %v2867_v1  ;;  %v2868_v63 = vadd.f32 1.0, %v3951_v3 }
 0x38b   :  { %v3953_v5 = vpop.eup %3952 }
 0x38c   :  { %3966 = vrcp.f32 %v2868_v63  ;;  %v2871_v6 = vadd.f32 1.0, %v3953_v5 }
 0x38d   :  { %v3955_v10 = vpop.eup %3954 }
 0x38e   :  { %3968 = vrcp.f32 %v2871_v6  ;;  %v2872_v12 = vadd.f32 1.0, %v3955_v10 }
 0x38f   :  { %v3957_v46 = vpop.eup %3956 }
 0x390   :  { %3970 = vrcp.f32 %v2872_v12  ;;  %v2875_v14 = vadd.f32 1.0, %v3957_v46 }
 0x391   :  { %v3959_v17 = vpop.eup %3958 }
 0x392   :  { %3972 = vrcp.f32 %v2875_v14  ;;  %v2876_v20 = vadd.f32 1.0, %v3959_v17 }
 0x393   :  { %v3961_v18 = vpop.eup %3960 }
 0x394   :  { %3974 = vrcp.f32 %v2876_v20  ;;  %v2911_v23 = vmul.f32 %v3961_v18, %v4646_v37 }
 0x395   :  { %v3963_v21 = vpop.eup %3962 }
 0x396   :  { %v2912_v25 = vmul.f32 %v3963_v21, %v4649_v42 }
 0x397   :  { %v3965_v30 = vpop.eup %3964 }
 0x398   :  { %v3384_v31 = vpack.c.bf16 %v2912_v25, %v2911_v23  ;;  %v2915_v33 = vmul.f32 %v3965_v30, %v4652_v15 }
 0x399   :  { %v3967_v32 = vpop.eup %3966 }
 0x39a   :  { %2974 = vst [vmem:[%s4679_s9 + $0x8] sm:$0xff] %v3384_v31  ;;  %v2916_v34 = vmul.f32 %v3967_v32, %v2801_v28 }
 0x39b   :  { %v3969_v36 = vpop.eup %3968 }
 0x39c   :  { %v3386_v16 = vpack.c.bf16 %v2916_v34, %v2915_v33  ;;  %v2919_v37 = vmul.f32 %v3969_v36, %v2805_v59 }
 0x39d   :  { %v3971_v39 = vpop.eup %3970 }
 0x39e   :  { %2976 = vst [vmem:[%s4679_s9 + $0x18] sm:$0xff] %v3386_v16  ;;  %v2920_v40 = vmul.f32 %v3971_v39, %v2807_v38 }
 0x39f   :  { %v3973_v8 = vpop.eup %3972 }
 0x3a0   :  { %v3388_v41 = vpack.c.bf16 %v2920_v40, %v2919_v37  ;;  %v2923_v45 = vmul.f32 %v3973_v8, %v2809_v56 }
 0x3a1   :  { %v3975_v42 = vpop.eup %3974 }
 0x3a2   :  { %2978 = vst [vmem:[%s4679_s9 + $0x28] sm:$0xff] %v3388_v41  ;;  %v2924_v47 = vmul.f32 %v3975_v42, %v2811_v58 }
 0x3a4   :  { %v3390_v22 = vpack.c.bf16 %v2924_v47, %v2923_v45 }
 0x3a6   :  { %2980 = vst [vmem:[%s4679_s9 + $0x38] sm:$0xff] %v3390_v22 }
 0x3a7   :  { %2993 = vsyncpa [#allocation4], 1 }

</bundles_post_ra>
